<compile_context>
chip_gen: v6e
topology: v6e:2x2x1
jax: 0.10.0
libtpu: 0.0.40
codegen_flags: <defaults>
</compile_context>

<pallas_src>
import functools

import jax
import jax.numpy as jnp
from jax.experimental import pallas as pl
from jax.experimental.pallas import tpu as pltpu

IN_FEATURES = 576
HIDDEN = 1024
NUM_CLASS = 1      # default head width of the original module
OUT_PAD = 128      # lane-dense padded output width


def _round_up(x, m):
    return (x + m - 1) // m * m


def _domain_classifier_kernel(x_ref, w1_ref, b1_ref, w2_ref, b2_ref, o_ref):
    # x:  (TB, 576) f32      w1: (576, 1024) bf16    b1: (1, 1024) f32
    # w2: (1, 1024) f32 (transposed second-layer weight)   b2: (1,) f32 in SMEM
    # o:  (TB, 128) f32 (only lane 0 is meaningful; sliced in the wrapper)

    # GradReverse.apply is identity in the forward pass.
    # TODO(synk): gradient reversal is a backward-only op; no forward effect.
    x = x_ref[...].astype(jnp.bfloat16)

    # Linear(576 -> 1024): bf16 MXU matmul, f32 accumulate, f32 bias add.
    h = jnp.dot(x, w1_ref[...], preferred_element_type=jnp.float32) + b1_ref[...]

    # Hardswish (f32 VPU math): x * relu6(x + 3) / 6
    h = h * jnp.clip(h + 3.0, 0.0, 6.0) * (1.0 / 6.0)

    # Dropout(p=0.2) is identity at inference time.
    # TODO(synk): training-mode dropout (random mask + 1/(1-p) scale) not emitted.

    # Linear(1024 -> 1): VPU broadcast multiply + lane reduction instead of a
    # degenerate N=1 MXU matmul.
    logits = jnp.sum(h * w2_ref[...], axis=-1, keepdims=True) + b2_ref[0]

    # Sigmoid with EUP approx reciprocal; broadcast to a lane-dense store.
    sig = pl.reciprocal(1.0 + jnp.exp(-logits), approx=True)
    o_ref[...] = jnp.broadcast_to(sig, o_ref.shape)


@functools.partial(jax.jit, static_argnames=("tb",))
def domain_classifier_forward(feature, w1_bf16, b1, w2_row, b2, *, tb=256):
    """feature: (B, 576) f32 -> (B, NUM_CLASS) f32 sigmoid probabilities."""
    B = feature.shape[0]
    tb = min(tb, _round_up(B, 8))          # batch tile (multiple of 8 sublanes)
    b_pad = _round_up(B, tb)
    if b_pad != B:
        feature = jnp.pad(feature, ((0, b_pad - B), (0, 0)))

    out = pl.pallas_call(
        _domain_classifier_kernel,
        out_shape=jax.ShapeDtypeStruct((b_pad, OUT_PAD), jnp.float32),
        grid_spec=pltpu.PrefetchScalarGridSpec(
            num_scalar_prefetch=0,
            grid=(b_pad // tb,),
            in_specs=[
                # x tiles stream through VMEM (double-buffered by Pallas).
                pl.BlockSpec((tb, IN_FEATURES), lambda i: (i, 0)),
                # Weights / biases: constant index -> DMA'd once, VMEM-resident.
                pl.BlockSpec((IN_FEATURES, HIDDEN), lambda i: (0, 0)),
                pl.BlockSpec((1, HIDDEN), lambda i: (0, 0)),
                pl.BlockSpec((1, HIDDEN), lambda i: (0, 0)),
                # b2 is a single scalar: keep it in SMEM (no wasted VMEM tile/DMA).
                pl.BlockSpec(memory_space=pltpu.MemorySpace.SMEM),
            ],
            out_specs=pl.BlockSpec((tb, OUT_PAD), lambda i: (i, 0)),
        ),
        compiler_params=pltpu.CompilerParams(
            dimension_semantics=("parallel",),   # batch tiles are independent
        ),
    )(feature, w1_bf16, b1, w2_row, b2)

    return out[:B, :NUM_CLASS]


def init_params(key):
    """Torch-Linear-style init (uniform +/- 1/sqrt(fan_in)); kernel layout.

    w1:     (576, 1024) bf16  (transposed vs torch, bf16 halves HBM traffic)
    b1:     (1, 1024)   f32
    w2_row: (1, 1024)   f32   (transposed second-layer weight row)
    b2:     (1,)        f32
    """
    k1, k2, k3, k4 = jax.random.split(key, 4)
    bound1 = 1.0 / jnp.sqrt(IN_FEATURES)
    bound2 = 1.0 / jnp.sqrt(HIDDEN)
    w1 = jax.random.uniform(k1, (IN_FEATURES, HIDDEN), jnp.float32, -bound1, bound1)
    b1 = jax.random.uniform(k2, (1, HIDDEN), jnp.float32, -bound1, bound1)
    w2_row = jax.random.uniform(k3, (1, HIDDEN), jnp.float32, -bound2, bound2)
    b2 = jax.random.uniform(k4, (1,), jnp.float32, -bound2, bound2)
    return w1.astype(jnp.bfloat16), b1, w2_row, b2


def reference_forward(feature, w1_bf16, b1, w2_row, b2):
    # Reference uses the same bf16-rounded first-layer operands (f32 math).
    x = feature.astype(jnp.bfloat16).astype(jnp.float32)
    w1 = w1_bf16.astype(jnp.float32)
    h = x @ w1 + b1
    h = h * jnp.clip(h + 3.0, 0.0, 6.0) / 6.0
    logits = h @ w2_row.T + b2.reshape(1, NUM_CLASS)
    return jax.nn.sigmoid(logits)


if __name__ == "__main__":
    key = jax.random.PRNGKey(0)
    k_x, k_p = jax.random.split(key)

    B = 8  # small batch
    feature = jax.random.normal(k_x, (B, IN_FEATURES), dtype=jnp.float32)
    w1_bf16, b1, w2_row, b2 = init_params(k_p)

    out = domain_classifier_forward(feature, w1_bf16, b1, w2_row, b2)
    out = jax.block_until_ready(out)

    ref = reference_forward(feature, w1_bf16, b1, w2_row, b2)
    assert out.shape == (B, NUM_CLASS), out.shape
    # bf16 first layer + EUP approx reciprocal in the sigmoid => loosened tol.
    assert jnp.allclose(out, ref, atol=1e-2, rtol=1e-2), (
        f"max abs diff = {jnp.max(jnp.abs(out - ref))}"
    )

    print("KERNEL_OK")
</pallas_src>

<mosaic_0001>
module attributes {stable_mosaic.version = 11 : i64} {
  func.func @_domain_classifier_kernel(%arg0: i32, %arg1: memref<8x576xf32, #tpu.memory_space<vmem>>, %arg2: memref<576x1024xbf16, #tpu.memory_space<vmem>>, %arg3: memref<1x1024xf32, #tpu.memory_space<vmem>>, %arg4: memref<1x1024xf32, #tpu.memory_space<vmem>>, %arg5: memref<1xf32, #tpu.memory_space<smem>>, %arg6: memref<8x128xf32, #tpu.memory_space<vmem>>) attributes {dimension_semantics = [#tpu.dimension_semantics<parallel>], iteration_bounds = array<i64: 1>, scalar_prefetch = 0 : i64, scratch_operands = 0 : i64, tpu.core_type = #tpu.core_type<tc>, window_params = [{transform_indices = @transform_0, window_bounds = array<i64: 8, 576>}, {pipeline_mode = #tpu.pipeline_mode<synchronous>, transform_indices = @transform_1, window_bounds = array<i64: 576, 1024>}, {pipeline_mode = #tpu.pipeline_mode<synchronous>, transform_indices = @transform_2, window_bounds = array<i64: 1, 1024>}, {pipeline_mode = #tpu.pipeline_mode<synchronous>, transform_indices = @transform_3, window_bounds = array<i64: 1, 1024>}, {transform_indices = @transform_4, window_bounds = array<i64: 1>}, {transform_indices = @transform_5, window_bounds = array<i64: 8, 128>}]} {
    %c0 = arith.constant 0 : index
    %c0_0 = arith.constant 0 : index
    %0 = vector.load %arg1[%c0, %c0_0] : memref<8x576xf32, #tpu.memory_space<vmem>>, vector<8x576xf32>
    %1 = arith.truncf %0 : vector<8x576xf32> to vector<8x576xbf16>
    %c0_1 = arith.constant 0 : index
    %c0_2 = arith.constant 0 : index
    %2 = vector.load %arg2[%c0_1, %c0_2] : memref<576x1024xbf16, #tpu.memory_space<vmem>>, vector<576x1024xbf16>
    %cst = arith.constant dense<0.000000e+00> : vector<8x1024xf32>
    %3 = tpu.matmul %1, %2, %cst {dimension_numbers = #tpu.dot_dimension_numbers<[1], [0], [0], [1], [0, 0, 1, 1], [], []>} : vector<8x576xbf16>, vector<576x1024xbf16>, vector<8x1024xf32> -> vector<8x1024xf32>
    %c0_3 = arith.constant 0 : index
    %c0_4 = arith.constant 0 : index
    %4 = vector.load %arg3[%c0_3, %c0_4] : memref<1x1024xf32, #tpu.memory_space<vmem>>, vector<1x1024xf32>
    %5 = vector.broadcast %4 : vector<1x1024xf32> to vector<8x1024xf32>
    %6 = arith.addf %3, %5 : vector<8x1024xf32>
    %cst_5 = arith.constant 3.000000e+00 : f32
    %7 = vector.broadcast %cst_5 : f32 to vector<8x1024xf32>
    %8 = arith.addf %6, %7 : vector<8x1024xf32>
    %cst_6 = arith.constant 0.000000e+00 : f32
    %cst_7 = arith.constant 6.000000e+00 : f32
    %9 = vector.broadcast %cst_6 : f32 to vector<8x1024xf32>
    %10 = arith.maximumf %9, %8 : vector<8x1024xf32>
    %11 = vector.broadcast %cst_7 : f32 to vector<8x1024xf32>
    %12 = arith.minimumf %11, %10 : vector<8x1024xf32>
    %13 = arith.mulf %6, %12 : vector<8x1024xf32>
    %cst_8 = arith.constant 0.166666672 : f32
    %14 = vector.broadcast %cst_8 : f32 to vector<8x1024xf32>
    %15 = arith.mulf %13, %14 : vector<8x1024xf32>
    %c0_9 = arith.constant 0 : index
    %c0_10 = arith.constant 0 : index
    %16 = vector.load %arg4[%c0_9, %c0_10] : memref<1x1024xf32, #tpu.memory_space<vmem>>, vector<1x1024xf32>
    %17 = vector.broadcast %16 : vector<1x1024xf32> to vector<8x1024xf32>
    %18 = arith.mulf %15, %17 : vector<8x1024xf32>
    %cst_11 = arith.constant dense<0.000000e+00> : vector<8xf32>
    %19 = vector.multi_reduction <add>, %18, %cst_11 [1] : vector<8x1024xf32> to vector<8xf32>
    %20 = vector.shape_cast %19 : vector<8xf32> to vector<8x1xf32>
    %c0_12 = arith.constant 0 : index
    %21 = memref.load %arg5[%c0_12] : memref<1xf32, #tpu.memory_space<smem>>
    %22 = vector.broadcast %21 : f32 to vector<8x1xf32>
    %23 = arith.addf %20, %22 : vector<8x1xf32>
    %cst_13 = arith.constant 0.000000e+00 : f32
    %24 = vector.broadcast %cst_13 : f32 to vector<8x1xf32>
    %25 = arith.subf %24, %23 : vector<8x1xf32>
    %26 = math.exp %25 : vector<8x1xf32>
    %cst_14 = arith.constant 1.000000e+00 : f32
    %27 = vector.broadcast %cst_14 : f32 to vector<8x1xf32>
    %28 = arith.addf %27, %26 : vector<8x1xf32>
    %29 = tpu.reciprocal %28 {approx = true} : vector<8x1xf32> -> vector<8x1xf32>
    %30 = vector.shape_cast %29 : vector<8x1xf32> to vector<8x1xf32>
    %31 = vector.broadcast %30 : vector<8x1xf32> to vector<8x128xf32>
    %c0_15 = arith.constant 0 : index
    %c0_16 = arith.constant 0 : index
    %32 = vector.load %arg6[%c0_15, %c0_16] : memref<8x128xf32, #tpu.memory_space<vmem>>, vector<8x128xf32>
    tpu.vector_store %arg6[%c0_15, %c0_16], %31 {strides = array<i32>} : memref<8x128xf32, #tpu.memory_space<vmem>>, vector<8x128xf32>,
    return
  }
  func.func @transform_0(%arg0: i32) -> (i32, i32) {
    %c0_i32 = arith.constant 0 : i32
    %c0_i32_0 = arith.constant 0 : i32
    return %arg0, %c0_i32 : i32, i32
  }
  func.func @transform_1(%arg0: i32) -> (i32, i32) {
    %c0_i32 = arith.constant 0 : i32
    %c0_i32_0 = arith.constant 0 : i32
    %c0_i32_1 = arith.constant 0 : i32
    return %c0_i32, %c0_i32_0 : i32, i32
  }
  func.func @transform_2(%arg0: i32) -> (i32, i32) {
    %c0_i32 = arith.constant 0 : i32
    %c0_i32_0 = arith.constant 0 : i32
    %c0_i32_1 = arith.constant 0 : i32
    return %c0_i32, %c0_i32_0 : i32, i32
  }
  func.func @transform_3(%arg0: i32) -> (i32, i32) {
    %c0_i32 = arith.constant 0 : i32
    %c0_i32_0 = arith.constant 0 : i32
    %c0_i32_1 = arith.constant 0 : i32
    return %c0_i32, %c0_i32_0 : i32, i32
  }
  func.func @transform_4(%arg0: i32) -> i32 {
    %c0_i32 = arith.constant 0 : i32
    %c0_i32_0 = arith.constant 0 : i32
    return %c0_i32 : i32
  }
  func.func @transform_5(%arg0: i32) -> (i32, i32) {
    %c0_i32 = arith.constant 0 : i32
    %c0_i32_0 = arith.constant 0 : i32
    return %arg0, %c0_i32 : i32, i32
  }
}

</mosaic_0001>

<bundles_post_ra>
// kernel: domain_classifier_forward.1
= control target key start
LH: loop header
LB: loop body
LE: loop exit
PB: predicated region body
PF: predicated region fallthrough
CT: control target
= control target key end

     0   :  { %11 = vsyncpa [#allocation4], 0  ;;  %s2982_s0 = inlined_call_operand.hbm [shape: f32[8,576], index: 0, kind: input, shape index: {}]   ;;  %s2983_s1 = inlined_call_operand.hbm [shape: bf16[576,1024], index: 1, kind: input, shape index: {}]   ;;  %s2984_s2 = inlined_call_operand.hbm [shape: f32[1,1024], index: 2, kind: input, shape index: {}]   ;;  %s2985_s3 = inlined_call_operand.hbm [shape: f32[1,1024], index: 3, kind: input, shape index: {}]   ;;  %s2986_s4 = inlined_call_operand.<no memory space> [shape: f32[1], index: 4, kind: input, shape index: {}]   ;;  %s2987_s5 = inlined_call_operand.vmem [shape: f32[8,128], index: 5, kind: output, shape index: {}]  }
   0x1   :  { %12 = vsyncpa [#allocation6], 0 }
   0x2   :  { %13 = vsyncpa [#allocation9], 0  ;;  %s2851_s18 = smov [#allocation5]  }
   0x3   :  { %s29_s19 = sshll.u32 %s2851_s18, 4  ;;  %s30_s19 = int_to_ptr.vmem [resolvable:$true] %s29_s19 }
   0x4   :  { %s2773_s20 = scalar_lea.vmem %s30_s19, 36864  ;;  %p2778_p1 = scmp.lt.s32.totalorder %s30_s19, %s30_s19 }
   0x5   :  { %p2774_p0 = scmp.ne.s32.totalorder %s30_s19, %s2773_s20  ;;  %p2779_p2 = scmp.lt.s32.totalorder %s2773_s20, %s2773_s20 }
   0x7   :  { %p2780_p3 = por %p2779_p2, %p2778_p1 }
   0x9   :  { %p2781_p4 = pnand %p2780_p3, %p2774_p0 }
   0xb   :  { %2784 = shalt.err (!%p2781_p4)
}
   0xc   :  { %s2852_s21 = smov 512   ;;  %s2853_s22 = smov 32  }
   0xd   :  { %35 = dma.hbm_to_vmem [thread:$0]  %s2983_s1, 36864, %s30_s19, [#allocation6], %s2852_s21, %s2852_s21, %s2853_s22  }
   0xe   :  { %s2854_s25 = smov [#allocation3]   ;;  %s2855_s27 = smov [#allocation7]  }
   0xf   :  { %s20_s26 = sshll.u32 %s2854_s25, 4  ;;  %s42_s28 = sshll.u32 %s2855_s27, 4  ;;  %s21_s26 = int_to_ptr.vmem [resolvable:$true] %s20_s26  ;;  %s43_s28 = int_to_ptr.vmem [resolvable:$true] %s42_s28 }
  0x10   :  { %s2793_s29 = scalar_lea.vmem %s21_s26, 640  ;;  %p2798_p6 = scmp.lt.s32.totalorder %s21_s26, %s21_s26 }
  0x11   :  { %p2794_p5 = scmp.ne.s32.totalorder %s21_s26, %s2793_s29  ;;  %p2799_p7 = scmp.lt.s32.totalorder %s2793_s29, %s2793_s29 }
  0x13   :  { %p2800_p8 = por %p2799_p7, %p2798_p6 }
  0x15   :  { %p2801_p9 = pnand %p2800_p8, %p2794_p5 }
  0x17   :  { %2804 = shalt.err (!%p2801_p9)
}
  0x18   :  { %23 = dma.hbm_to_vmem [thread:$0]  %s2982_s0, 640, %s21_s26, [#allocation4]  }
  0x19   :  { %s2813_s7 = scalar_lea.vmem %s43_s28, 128  ;;  %p2818_p11 = scmp.lt.s32.totalorder %s43_s28, %s43_s28 }
  0x1a   :  { %p2814_p10 = scmp.ne.s32.totalorder %s43_s28, %s2813_s7  ;;  %p2819_p12 = scmp.lt.s32.totalorder %s2813_s7, %s2813_s7 }
  0x1c   :  { %p2820_p13 = por %p2819_p12, %p2818_p11 }
  0x1e   :  { %p2821_p0 = pnand %p2820_p13, %p2814_p10 }
  0x20   :  { %2824 = shalt.err (!%p2821_p0)
}
  0x21   :  { %45 = dma.hbm_to_vmem [thread:$0]  %s2984_s2, 128, %s43_s28, [#allocation6]  }
  0x22   :  { %s2856_s9 = smov [#allocation8]  }
  0x23   :  { %s52_s10 = sshll.u32 %s2856_s9, 4  ;;  %s53_s10 = int_to_ptr.vmem [resolvable:$true] %s52_s10 }
  0x24   :  { %s2833_s11 = scalar_lea.vmem %s53_s10, 128  ;;  %p2838_p2 = scmp.lt.s32.totalorder %s53_s10, %s53_s10 }
  0x25   :  { %p2834_p1 = scmp.ne.s32.totalorder %s53_s10, %s2833_s11  ;;  %p2839_p3 = scmp.lt.s32.totalorder %s2833_s11, %s2833_s11 }
  0x27   :  { %p2840_p4 = por %p2839_p3, %p2838_p2 }
  0x29   :  { %p2841_p5 = pnand %p2840_p4, %p2834_p1 }
  0x2b   :  { %2844 = shalt.err (!%p2841_p5)
}
  0x2c   :  { %55 = dma.hbm_to_vmem [thread:$0]  %s2985_s3, 128, %s53_s10, [#allocation9]  }
  0x2d   :  { %2845 = dma.done.wait [#allocation4], 640  }
  0x2e   :  { %2846 = vsyncadd [#allocation4], 4294966656 }
  0x2f   :  { %2847 = dma.done.wait [#allocation6], 36992  }
  0x30   :  { %2848 = vsyncadd [#allocation6], 4294930304 }
  0x31   :  { %2849 = dma.done.wait [#allocation9], 128  }
  0x32   :  { %2850 = vsyncadd [#allocation9], 4294967168  ;;  %v137_v0 = vld [vmem:[#allocation5 + $0x1c0] sm:$0xff]  ;;  %v74_v54 = vld [vmem:[#allocation3 + $0x18] sm:$0xff]  ;;  %vm1851_vm0 = vcmask 523264  }
  0x33   :  { %v141_v1 = vld [vmem:[#allocation5 + $0x1e0] sm:$0xff]  ;;  %v2902_v59 = vpack.c.bf16 %v74_v54, %v74_v54 }
  0x34   :  { %v265_v2 = vld [vmem:[#allocation5 + $0x5c0] sm:$0xff]  ;;  %v2519_v3 = vcombine.high %v137_v0, %v141_v1  ;;  %v2518_v5 = vcombine.low %v137_v0, %v141_v1 }
  0x35   :  { %v269_v4 = vld [vmem:[#allocation5 + $0x5e0] sm:$0xff]  ;;  %1928 = vmatprep.mubr.bf16.mxu1 %v2902_v59 }
  0x36   :  { %v129_v6 = vld [vmem:[#allocation5 + $0x180] sm:$0xff]  ;;  %v2647_v8 = vcombine.high %v265_v2, %v269_v4  ;;  %v2646_v9 = vcombine.low %v265_v2, %v269_v4  ;;  %1855 = vmatprep.subr.bf16.mxu0 %v2519_v3 }
  0x37   :  { %v133_v7 = vld [vmem:[#allocation5 + $0x1a0] sm:$0xff]  ;;  %1856 = vmatpush1.bf16.msra.mxu0 %v2518_v5 }
  0x38   :  { %v2511_v10 = vcombine.high %v129_v6, %v133_v7  ;;  %v257_v11 = vld [vmem:[#allocation5 + $0x580] sm:$0xff]  ;;  %1896 = vmatprep.subr.bf16.mxu1 %v2647_v8  ;;  %v2510_v18 = vcombine.low %v129_v6, %v133_v7 }
  0x39   :  { %v261_v12 = vld [vmem:[#allocation5 + $0x5a0] sm:$0xff]  ;;  %1897 = vmatpush1.bf16.msra.mxu1 %v2646_v9 }
  0x3a   :  { %v121_v13 = vld [vmem:[#allocation5 + $0x140] sm:$0xff]  ;;  %v2639_v14 = vcombine.high %v257_v11, %v261_v12  ;;  %1857 = vmatprep.subr.bf16.mxu0 %v2511_v10  ;;  %v2638_v19 = vcombine.low %v257_v11, %v261_v12 }
  0x3b   :  { %v125_v15 = vld [vmem:[#allocation5 + $0x160] sm:$0xff]  ;;  %1858 = vmatpush1.bf16.msra.mxu0 %v2510_v18 }
  0x3c   :  { %v249_v16 = vld [vmem:[#allocation5 + $0x540] sm:$0xff]  ;;  %v2503_v20 = vcombine.high %v121_v13, %v125_v15  ;;  %1898 = vmatprep.subr.bf16.mxu1 %v2639_v14  ;;  %v2502_v26 = vcombine.low %v121_v13, %v125_v15 }
  0x3d   :  { %v253_v17 = vld [vmem:[#allocation5 + $0x560] sm:$0xff]  ;;  %1899 = vmatpush1.bf16.msra.mxu1 %v2638_v19 }
  0x3e   :  { %v2631_v21 = vcombine.high %v249_v16, %v253_v17  ;;  %v113_v22 = vld [vmem:[#allocation5 + $0x100] sm:$0xff]  ;;  %1859 = vmatprep.subr.bf16.mxu0 %v2503_v20  ;;  %v2630_v27 = vcombine.low %v249_v16, %v253_v17 }
  0x3f   :  { %v117_v23 = vld [vmem:[#allocation5 + $0x120] sm:$0xff]  ;;  %1860 = vmatpush1.bf16.msra.mxu0 %v2502_v26 }
  0x40   :  { %v241_v24 = vld [vmem:[#allocation5 + $0x500] sm:$0xff]  ;;  %v2495_v28 = vcombine.high %v113_v22, %v117_v23  ;;  %1900 = vmatprep.subr.bf16.mxu1 %v2631_v21  ;;  %v2494_v34 = vcombine.low %v113_v22, %v117_v23 }
  0x41   :  { %v245_v25 = vld [vmem:[#allocation5 + $0x520] sm:$0xff]  ;;  %1901 = vmatpush1.bf16.msra.mxu1 %v2630_v27 }
  0x42   :  { %v2623_v29 = vcombine.high %v241_v24, %v245_v25  ;;  %v105_v30 = vld [vmem:[#allocation5 + $0xc0] sm:$0xff]  ;;  %1861 = vmatprep.subr.bf16.mxu0 %v2495_v28  ;;  %v2622_v35 = vcombine.low %v241_v24, %v245_v25 }
  0x43   :  { %v109_v31 = vld [vmem:[#allocation5 + $0xe0] sm:$0xff]  ;;  %1862 = vmatpush1.bf16.msra.mxu0 %v2494_v34 }
  0x44   :  { %v233_v32 = vld [vmem:[#allocation5 + $0x4c0] sm:$0xff]  ;;  %v2487_v36 = vcombine.high %v105_v30, %v109_v31  ;;  %1902 = vmatprep.subr.bf16.mxu1 %v2623_v29  ;;  %v2486_v42 = vcombine.low %v105_v30, %v109_v31 }
  0x45   :  { %v237_v33 = vld [vmem:[#allocation5 + $0x4e0] sm:$0xff]  ;;  %1903 = vmatpush1.bf16.msra.mxu1 %v2622_v35 }
  0x46   :  { %v2615_v37 = vcombine.high %v233_v32, %v237_v33  ;;  %v97_v38 = vld [vmem:[#allocation5 + $0x80] sm:$0xff]  ;;  %1863 = vmatprep.subr.bf16.mxu0 %v2487_v36  ;;  %v2614_v43 = vcombine.low %v233_v32, %v237_v33 }
  0x47   :  { %v101_v39 = vld [vmem:[#allocation5 + $0xa0] sm:$0xff]  ;;  %1864 = vmatpush1.bf16.msra.mxu0 %v2486_v42 }
  0x48   :  { %v225_v40 = vld [vmem:[#allocation5 + $0x480] sm:$0xff]  ;;  %v2479_v44 = vcombine.high %v97_v38, %v101_v39  ;;  %1904 = vmatprep.subr.bf16.mxu1 %v2615_v37  ;;  %v2478_v50 = vcombine.low %v97_v38, %v101_v39 }
  0x49   :  { %v229_v41 = vld [vmem:[#allocation5 + $0x4a0] sm:$0xff]  ;;  %1905 = vmatpush1.bf16.msra.mxu1 %v2614_v43 }
  0x4a   :  { %v2607_v45 = vcombine.high %v225_v40, %v229_v41  ;;  %v89_v46 = vld [vmem:[#allocation5 + $0x40] sm:$0xff]  ;;  %1865 = vmatprep.subr.bf16.mxu0 %v2479_v44  ;;  %v2606_v51 = vcombine.low %v225_v40, %v229_v41 }
  0x4b   :  { %v93_v47 = vld [vmem:[#allocation5 + $0x60] sm:$0xff]  ;;  %1866 = vmatpush1.bf16.msra.mxu0 %v2478_v50 }
  0x4c   :  { %v217_v48 = vld [vmem:[#allocation5 + $0x440] sm:$0xff]  ;;  %v2471_v52 = vcombine.high %v89_v46, %v93_v47  ;;  %1906 = vmatprep.subr.bf16.mxu1 %v2607_v45  ;;  %v2470_v62 = vcombine.low %v89_v46, %v93_v47 }
  0x4d   :  { %v221_v49 = vld [vmem:[#allocation5 + $0x460] sm:$0xff]  ;;  %1907 = vmatpush1.bf16.msra.mxu1 %v2606_v51 }
  0x4e   :  { %v72_v53 = vld [vmem:[#allocation3 + $0x8] sm:$0xff]  ;;  %v2599_v55 = vcombine.high %v217_v48, %v221_v49  ;;  %1867 = vmatprep.subr.bf16.mxu0 %v2471_v52  ;;  %v2598_v63 = vcombine.low %v217_v48, %v221_v49 }
  0x4f   :  { %v81_v56 = vld [vmem:[#allocation5] sm:$0xff]  ;;  %v2900_v58 = vpack.c.bf16 %v72_v53, %v72_v53  ;;  %1868 = vmatpush1.bf16.msra.mxu0 %v2470_v62 }
  0x50   :  { %v85_v57 = vld [vmem:[#allocation5 + $0x20] sm:$0xff]  ;;  %1908 = vmatprep.subr.bf16.mxu1 %v2599_v55 }
  0x51   :  { %v209_v60 = vld [vmem:[#allocation5 + $0x400] sm:$0xff]  ;;  %1887 = vmatprep.mubr.bf16.mxu0 %v2900_v58  ;;  %v2463_v0 = vcombine.high %v81_v56, %v85_v57  ;;  %v2462_v6 = vcombine.low %v81_v56, %v85_v57  ;;  %1909 = vmatpush1.bf16.msra.mxu1 %v2598_v63 }
  0x52   :  { %v213_v61 = vld [vmem:[#allocation5 + $0x420] sm:$0xff] }
  0x53   :  { %v2591_v1 = vcombine.high %v209_v60, %v213_v61  ;;  %v201_v2 = vld [vmem:[#allocation5 + $0x3c0] sm:$0xff]  ;;  %1869 = vmatprep.subr.bf16.mxu0 %v2463_v0  ;;  %v2590_v7 = vcombine.low %v209_v60, %v213_v61 }
  0x54   :  { %v205_v3 = vld [vmem:[#allocation5 + $0x3e0] sm:$0xff]  ;;  %1870 = vmatpush1.bf16.msra.mxu0 %v2462_v6  ;;  %v138_v6 = vld [vmem:[#allocation5 + $0x1c8] sm:$0xff] }
  0x55   :  { %v329_v4 = vld [vmem:[#allocation5 + $0x7c0] sm:$0xff]  ;;  %v2583_v8 = vcombine.high %v201_v2, %v205_v3  ;;  %1910 = vmatprep.subr.bf16.mxu1 %v2591_v1  ;;  %v2582_v14 = vcombine.low %v201_v2, %v205_v3 }
  0x56   :  { %v333_v5 = vld [vmem:[#allocation5 + $0x7e0] sm:$0xff]  ;;  %1911 = vmatpush1.bf16.msra.mxu1 %v2590_v7  ;;  %v142_v7 = vld [vmem:[#allocation5 + $0x1e8] sm:$0xff] }
  0x57   :  { %v2711_v9 = vcombine.high %v329_v4, %v333_v5  ;;  %v193_v10 = vld [vmem:[#allocation5 + $0x380] sm:$0xff]  ;;  %1871 = vmatprep.subr.bf16.mxu0 %v2583_v8  ;;  %v2710_v15 = vcombine.low %v329_v4, %v333_v5 }
  0x58   :  { %v197_v11 = vld [vmem:[#allocation5 + $0x3a0] sm:$0xff]  ;;  %1872 = vmatpush2.bf16.msra.mxu0 %v2582_v14 }
  0x59   :  { %v321_v12 = vld [vmem:[#allocation5 + $0x780] sm:$0xff]  ;;  %v2575_v16 = vcombine.high %v193_v10, %v197_v11  ;;  %1912 = vmatprep.subr.bf16.mxu1 %v2711_v9  ;;  %v2574_v22 = vcombine.low %v193_v10, %v197_v11  ;;  %v71_v9 = vld [vmem:[#allocation3] sm:$0xff]  ;;  %v73_v11 = vld [vmem:[#allocation3 + $0x10] sm:$0xff] }
  0x5a   :  { %v325_v13 = vld [vmem:[#allocation5 + $0x7a0] sm:$0xff]  ;;  %1913 = vmatpush2.bf16.msra.mxu1 %v2710_v15 }
  0x5b   :  { %v2703_v17 = vcombine.high %v321_v12, %v325_v13  ;;  %v185_v18 = vld [vmem:[#allocation5 + $0x340] sm:$0xff]  ;;  %1873 = vmatprep.subr.bf16.mxu0 %v2575_v16  ;;  %v2702_v23 = vcombine.low %v321_v12, %v325_v13  ;;  %v2521_v13 = vcombine.high %v138_v6, %v142_v7  ;;  %v2906_v16 = vpack.c.bf16 %v71_v9, %v71_v9 }
  0x5c   :  { %v189_v19 = vld [vmem:[#allocation5 + $0x360] sm:$0xff]  ;;  %1874 = vmatpush2.bf16.msra.mxu0 %v2574_v22 }
  0x5d   :  { %v313_v20 = vld [vmem:[#allocation5 + $0x740] sm:$0xff]  ;;  %v2567_v24 = vcombine.high %v185_v18, %v189_v19  ;;  %1914 = vmatprep.subr.bf16.mxu1 %v2703_v17  ;;  %v2566_v30 = vcombine.low %v185_v18, %v189_v19  ;;  %v130_v17 = vld [vmem:[#allocation5 + $0x188] sm:$0xff]  ;;  %v2908_v19 = vpack.c.bf16 %v73_v11, %v73_v11 }
  0x5e   :  { %v317_v21 = vld [vmem:[#allocation5 + $0x760] sm:$0xff]  ;;  %1915 = vmatpush2.bf16.msra.mxu1 %v2702_v23  ;;  %v134_v18 = vld [vmem:[#allocation5 + $0x1a8] sm:$0xff] }
  0x5f   :  { %v2695_v25 = vcombine.high %v313_v20, %v317_v21  ;;  %v177_v26 = vld [vmem:[#allocation5 + $0x300] sm:$0xff]  ;;  %1875 = vmatprep.subr.bf16.mxu0 %v2567_v24  ;;  %v2694_v31 = vcombine.low %v313_v20, %v317_v21  ;;  %v2520_v21 = vcombine.low %v138_v6, %v142_v7  ;;  %v2513_v23 = vcombine.high %v130_v17, %v134_v18  ;;  %v246_v6 = vld [vmem:[#allocation5 + $0x528] sm:$0xff] }
  0x60   :  { %v181_v27 = vld [vmem:[#allocation5 + $0x320] sm:$0xff]  ;;  %1876 = vmatpush2.bf16.msra.mxu0 %v2566_v30  ;;  %v82_v7 = vld [vmem:[#allocation5 + $0x8] sm:$0xff] }
  0x61   :  { %v305_v28 = vld [vmem:[#allocation5 + $0x700] sm:$0xff]  ;;  %v2559_v32 = vcombine.high %v177_v26, %v181_v27  ;;  %1916 = vmatprep.subr.bf16.mxu1 %v2695_v25  ;;  %v2558_v38 = vcombine.low %v177_v26, %v181_v27  ;;  %v122_v26 = vld [vmem:[#allocation5 + $0x148] sm:$0xff] }
  0x62   :  { %v309_v29 = vld [vmem:[#allocation5 + $0x720] sm:$0xff]  ;;  %1917 = vmatpush2.bf16.msra.mxu1 %v2694_v31  ;;  %v126_v27 = vld [vmem:[#allocation5 + $0x168] sm:$0xff] }
  0x63   :  { %v2687_v33 = vcombine.high %v305_v28, %v309_v29  ;;  %v169_v34 = vld [vmem:[#allocation5 + $0x2c0] sm:$0xff]  ;;  %1877 = vmatprep.subr.bf16.mxu0 %v2559_v32  ;;  %v2686_v39 = vcombine.low %v305_v28, %v309_v29  ;;  %v2512_v29 = vcombine.low %v130_v17, %v134_v18  ;;  %v2505_v31 = vcombine.high %v122_v26, %v126_v27  ;;  %v206_v17 = vld [vmem:[#allocation5 + $0x3e8] sm:$0xff] }
  0x64   :  { %v173_v35 = vld [vmem:[#allocation5 + $0x2e0] sm:$0xff]  ;;  %1878 = vmatpush2.bf16.msra.mxu0 %v2558_v38  ;;  %v2504_v38 = vcombine.low %v122_v26, %v126_v27  ;;  %v198_v26 = vld [vmem:[#allocation5 + $0x3a8] sm:$0xff] }
  0x65   :  { %v297_v36 = vld [vmem:[#allocation5 + $0x6c0] sm:$0xff]  ;;  %v2551_v40 = vcombine.high %v169_v34, %v173_v35  ;;  %1918 = vmatprep.subr.bf16.mxu1 %v2687_v33  ;;  %v2550_v46 = vcombine.low %v169_v34, %v173_v35  ;;  %v2857_v34 = vmov 0   ;;  %v114_v35 = vld [vmem:[#allocation5 + $0x108] sm:$0xff] }
  0x66   :  { %v301_v37 = vld [vmem:[#allocation5 + $0x6e0] sm:$0xff]  ;;  %1919 = vmatpush2.bf16.msra.mxu1 %v2686_v39 }
  0x67   :  { %v2679_v41 = vcombine.high %v297_v36, %v301_v37  ;;  %v161_v42 = vld [vmem:[#allocation5 + $0x280] sm:$0xff]  ;;  %1879 = vmatprep.subr.bf16.mxu0 %v2551_v40  ;;  %v2678_v47 = vcombine.low %v297_v36, %v301_v37  ;;  %v118_v36 = vld [vmem:[#allocation5 + $0x128] sm:$0xff] }
  0x68   :  { %v165_v43 = vld [vmem:[#allocation5 + $0x2a0] sm:$0xff]  ;;  %1880 = vmatpush2.bf16.msra.mxu0 %v2550_v46  ;;  %v2497_v40 = vcombine.high %v114_v35, %v118_v36  ;;  %v75_v46 = vld [vmem:[#allocation3 + $0x20] sm:$0xff] }
  0x69   :  { %v289_v44 = vld [vmem:[#allocation5 + $0x680] sm:$0xff]  ;;  %v2543_v48 = vcombine.high %v161_v42, %v165_v43  ;;  %1920 = vmatprep.subr.bf16.mxu1 %v2679_v41  ;;  %v2542_v54 = vcombine.low %v161_v42, %v165_v43  ;;  %v266_v41 = vld [vmem:[#allocation5 + $0x5c8] sm:$0xff] }
  0x6a   :  { %v293_v45 = vld [vmem:[#allocation5 + $0x6a0] sm:$0xff]  ;;  %1921 = vmatpush2.bf16.msra.mxu1 %v2678_v47  ;;  %v270_v42 = vld [vmem:[#allocation5 + $0x5e8] sm:$0xff]  ;;  %v2496_v47 = vcombine.low %v114_v35, %v118_v36 }
  0x6b   :  { %v2671_v49 = vcombine.high %v289_v44, %v293_v45  ;;  %v153_v50 = vld [vmem:[#allocation5 + $0x240] sm:$0xff]  ;;  %1881 = vmatprep.subr.bf16.mxu0 %v2543_v48  ;;  %v2670_v55 = vcombine.low %v289_v44, %v293_v45  ;;  %v106_v43 = vld [vmem:[#allocation5 + $0xc8] sm:$0xff]  ;;  %v2649_v48 = vcombine.high %v266_v41, %v270_v42 }
  0x6c   :  { %v157_v51 = vld [vmem:[#allocation5 + $0x260] sm:$0xff]  ;;  %1882 = vmatpush2.bf16.msra.mxu0 %v2542_v54  ;;  %v110_v44 = vld [vmem:[#allocation5 + $0xe8] sm:$0xff] }
  0x6d   :  { %v281_v52 = vld [vmem:[#allocation5 + $0x640] sm:$0xff]  ;;  %v2535_v56 = vcombine.high %v153_v50, %v157_v51  ;;  %1922 = vmatprep.subr.bf16.mxu1 %v2671_v49  ;;  %v2534_v0 = vcombine.low %v153_v50, %v157_v51  ;;  %v2489_v49 = vcombine.high %v106_v43, %v110_v44  ;;  %v258_v50 = vld [vmem:[#allocation5 + $0x588] sm:$0xff] }
  0x6e   :  { %v285_v53 = vld [vmem:[#allocation5 + $0x660] sm:$0xff]  ;;  %1923 = vmatpush2.bf16.msra.mxu1 %v2670_v55  ;;  %v262_v51 = vld [vmem:[#allocation5 + $0x5a8] sm:$0xff]  ;;  %v2648_v55 = vcombine.low %v266_v41, %v270_v42 }
  0x6f   :  { %v2663_v57 = vcombine.high %v281_v52, %v285_v53  ;;  %v145_v60 = vld [vmem:[#allocation5 + $0x200] sm:$0xff]  ;;  %1883 = vmatprep.subr.bf16.mxu0 %v2535_v56  ;;  %v2662_v1 = vcombine.low %v281_v52, %v285_v53  ;;  %v2914_v52 = vpack.c.bf16 %v75_v46, %v75_v46  ;;  %v98_v53 = vld [vmem:[#allocation5 + $0x88] sm:$0xff]  ;;  %v2488_v56 = vcombine.low %v106_v43, %v110_v44 }
  0x70   :  { %v149_v61 = vld [vmem:[#allocation5 + $0x220] sm:$0xff]  ;;  %1884 = vmatpush2.bf16.msra.mxu0 %v2534_v0  ;;  %v102_v54 = vld [vmem:[#allocation5 + $0xa8] sm:$0xff] }
  0x71   :  { %v273_v62 = vld [vmem:[#allocation5 + $0x600] sm:$0xff]  ;;  %v2527_v2 = vcombine.high %v145_v60, %v149_v61  ;;  %1924 = vmatprep.subr.bf16.mxu1 %v2663_v57  ;;  %v2526_v8 = vcombine.low %v145_v60, %v149_v61  ;;  %v2641_v57 = vcombine.high %v258_v50, %v262_v51  ;;  %v2481_v60 = vcombine.high %v98_v53, %v102_v54  ;;  %v250_v61 = vld [vmem:[#allocation5 + $0x548] sm:$0xff] }
  0x72   :  { %v277_v63 = vld [vmem:[#allocation5 + $0x620] sm:$0xff]  ;;  %1925 = vmatpush2.bf16.msra.mxu1 %v2662_v1  ;;  %v94_v0 = vld [vmem:[#allocation5 + $0x68] sm:$0xff]  ;;  %v2640_v1 = vcombine.low %v258_v50, %v262_v51 }
  0x73   :  { %v2655_v3 = vcombine.high %v273_v62, %v277_v63  ;;  %v361_v4 = vld [vmem:[#allocation5 + $0x8c0] sm:$0xff]  ;;  %1885 = vmatprep.subr.bf16.mxu0 %v2527_v2  ;;  %v2654_v10 = vcombine.low %v273_v62, %v277_v63  ;;  %v254_v62 = vld [vmem:[#allocation5 + $0x568] sm:$0xff]  ;;  %v2480_v2 = vcombine.low %v98_v53, %v102_v54 }
  0x74   :  { %v365_v5 = vld [vmem:[#allocation5 + $0x8e0] sm:$0xff]  ;;  %1886 = vmatpush2.bf16.msra.mxu0 %v2526_v8  ;;  %v90_v63 = vld [vmem:[#allocation5 + $0x48] sm:$0xff]  ;;  %v2632_v9 = vcombine.low %v250_v61, %v254_v62 }
  0x75   :  { %v2743_v12 = vcombine.high %v361_v4, %v365_v5  ;;  %1926 = vmatprep.subr.bf16.mxu1 %v2655_v3  ;;  %v353_v14 = vld [vmem:[#allocation5 + $0x880] sm:$0xff]  ;;  %v2742_v20 = vcombine.low %v361_v4, %v365_v5  ;;  %v2633_v3 = vcombine.high %v250_v61, %v254_v62  ;;  %v2473_v4 = vcombine.high %v90_v63, %v94_v0  ;;  %v242_v5 = vld [vmem:[#allocation5 + $0x508] sm:$0xff] }
  0x76   :  { %v357_v15 = vld [vmem:[#allocation5 + $0x8a0] sm:$0xff]  ;;  %1927 = vmatpush2.bf16.msra.mxu1 %v2654_v10  ;;  %v86_v8 = vld [vmem:[#allocation5 + $0x28] sm:$0xff]  ;;  %v2472_v10 = vcombine.low %v90_v63, %v94_v0  ;;  %v2625_v11 = vcombine.high %v242_v5, %v246_v6  ;;  %v2624_v18 = vcombine.low %v242_v5, %v246_v6 }
  0x77   :  { %1945 = vmatprep.subr.bf16.mxu0 %v2743_v12  ;;  %v2735_v22 = vcombine.high %v353_v14, %v357_v15  ;;  %1978 = vmatprep.subr.bf16.mxu1 %v2521_v13  ;;  %v345_v24 = vld [vmem:[#allocation5 + $0x840] sm:$0xff]  ;;  %v2734_v28 = vcombine.low %v353_v14, %v357_v15  ;;  %v2465_v12 = vcombine.high %v82_v7, %v86_v8  ;;  %v234_v13 = vld [vmem:[#allocation5 + $0x4c8] sm:$0xff] }
  0x78   :  { %v349_v25 = vld [vmem:[#allocation5 + $0x860] sm:$0xff]  ;;  %1888 = vmatmul.mubr.bf16.vlgmr.msra.gmra.mxu0 %v2906_v16  ;;  %v238_v14 = vld [vmem:[#allocation5 + $0x4e8] sm:$0xff] }
  0x79   :  { %1929 = vmatmul.mubr.bf16.vlgmr.msra.gmra.mxu1 %v2908_v19  ;;  %1946 = vmatpush1.bf16.msra.mxu0 %v2742_v20  ;;  %v2727_v30 = vcombine.high %v345_v24, %v349_v25  ;;  %v337_v32 = vld [vmem:[#allocation5 + $0x800] sm:$0xff]  ;;  %v2726_v37 = vcombine.low %v345_v24, %v349_v25  ;;  %v202_v15 = vld [vmem:[#allocation5 + $0x3c8] sm:$0xff]  ;;  %v2464_v20 = vcombine.low %v82_v7, %v86_v8 }
  0x7a   :  { %1979 = vmatpush1.bf16.msra.mxu1 %v2520_v21  ;;  %1947 = vmatprep.subr.bf16.mxu0 %v2735_v22  ;;  %v341_v33 = vld [vmem:[#allocation5 + $0x820] sm:$0xff]  ;;  %v2617_v21 = vcombine.high %v234_v13, %v238_v14  ;;  %v2585_v22 = vcombine.high %v202_v15, %v206_v17  ;;  %v230_v24 = vld [vmem:[#allocation5 + $0x4a8] sm:$0xff]  ;;  %v2616_v27 = vcombine.low %v234_v13, %v238_v14 }
  0x7b   :  { %1980 = vmatprep.subr.bf16.mxu1 %v2513_v23  ;;  %1969 = vmatprep.mubr.bf16.mxu0 %v2857_v34  ;;  %v2719_v39 = vcombine.high %v337_v32, %v341_v33  ;;  %v2718_v45 = vcombine.low %v337_v32, %v341_v33  ;;  %v226_v23 = vld [vmem:[#allocation5 + $0x488] sm:$0xff] }
  0x7c   :  { %2010 = vmatprep.mubr.bf16.mxu1 %v2900_v58  ;;  %v194_v25 = vld [vmem:[#allocation5 + $0x388] sm:$0xff]  ;;  %v2608_v36 = vcombine.low %v226_v23, %v230_v24 }
  0x7d   :  { %1948 = vmatpush1.bf16.msra.mxu0 %v2734_v28  ;;  %v2584_v28 = vcombine.low %v202_v15, %v206_v17  ;;  %v222_v32 = vld [vmem:[#allocation5 + $0x468] sm:$0xff] }
  0x7e   :  { %1981 = vmatpush1.bf16.msra.mxu1 %v2512_v29  ;;  %1949 = vmatprep.subr.bf16.mxu0 %v2727_v30  ;;  %v2609_v29 = vcombine.high %v226_v23, %v230_v24  ;;  %v2577_v30 = vcombine.high %v194_v25, %v198_v26  ;;  %v186_v33 = vld [vmem:[#allocation5 + $0x348] sm:$0xff] }
  0x7f   :  { %1982 = vmatprep.subr.bf16.mxu1 %v2505_v31  ;;  %v218_v31 = vld [vmem:[#allocation5 + $0x448] sm:$0xff] }
  0x80   :  { %v190_v35 = vld [vmem:[#allocation5 + $0x368] sm:$0xff]  ;;  %v2600_v44 = vcombine.low %v218_v31, %v222_v32 }
  0x81   :  { %1950 = vmatpush1.bf16.msra.mxu0 %v2726_v37  ;;  %v2576_v37 = vcombine.low %v194_v25, %v198_v26  ;;  %v214_v41 = vld [vmem:[#allocation5 + $0x428] sm:$0xff] }
  0x82   :  { %1983 = vmatpush1.bf16.msra.mxu1 %v2504_v38  ;;  %1951 = vmatprep.subr.bf16.mxu0 %v2719_v39  ;;  %v2601_v38 = vcombine.high %v218_v31, %v222_v32  ;;  %v2569_v39 = vcombine.high %v186_v33, %v190_v35  ;;  %v178_v42 = vld [vmem:[#allocation5 + $0x308] sm:$0xff] }
  0x83   :  { %1984 = vmatprep.subr.bf16.mxu1 %v2497_v40  ;;  %v210_v40 = vld [vmem:[#allocation5 + $0x408] sm:$0xff] }
  0x84   :  { %v182_v43 = vld [vmem:[#allocation5 + $0x328] sm:$0xff]  ;;  %v2593_v46 = vcombine.high %v210_v40, %v214_v41  ;;  %v2592_v53 = vcombine.low %v210_v40, %v214_v41 }
  0x85   :  { %1952 = vmatpush1.bf16.msra.mxu0 %v2718_v45  ;;  %v2568_v45 = vcombine.low %v186_v33, %v190_v35  ;;  %v170_v50 = vld [vmem:[#allocation5 + $0x2c8] sm:$0xff]  ;;  %v2560_v54 = vcombine.low %v178_v42, %v182_v43 }
  0x86   :  { %1985 = vmatpush1.bf16.msra.mxu1 %v2496_v47  ;;  %2019 = vmatprep.subr.bf16.mxu0 %v2649_v48  ;;  %v2561_v47 = vcombine.high %v178_v42, %v182_v43  ;;  %v330_v48 = vld [vmem:[#allocation5 + $0x7c8] sm:$0xff] }
  0x87   :  { %1986 = vmatprep.subr.bf16.mxu1 %v2489_v49  ;;  %v334_v49 = vld [vmem:[#allocation5 + $0x7e8] sm:$0xff] }
  0x88   :  { %2750 = vmatmul.mubr.msk.bf16.vlgmr.msra.gmra.mxu0 %vm1851_vm0, %v2914_v52  ;;  %v174_v51 = vld [vmem:[#allocation5 + $0x2e8] sm:$0xff]  ;;  %v2712_v63 = vcombine.low %v330_v48, %v334_v49 }
  0x89   :  { %2020 = vmatpush1.bf16.msra.mxu0 %v2648_v55  ;;  %2051 = vmatprep.mubr.bf16.mxu0 %v2902_v59  ;;  %v2713_v55 = vcombine.high %v330_v48, %v334_v49  ;;  %v162_v61 = vld [vmem:[#allocation5 + $0x288] sm:$0xff]  ;;  %v2552_v0 = vcombine.low %v170_v50, %v174_v51 }
  0x8a   :  { %1987 = vmatpush1.bf16.msra.mxu1 %v2488_v56  ;;  %2021 = vmatprep.subr.bf16.mxu0 %v2641_v57  ;;  %v2553_v56 = vcombine.high %v170_v50, %v174_v51  ;;  %v322_v57 = vld [vmem:[#allocation5 + $0x788] sm:$0xff] }
  0x8b   :  { %1988 = vmatprep.subr.bf16.mxu1 %v2481_v60  ;;  %v326_v60 = vld [vmem:[#allocation5 + $0x7a8] sm:$0xff] }
  0x8c   :  { %v166_v62 = vld [vmem:[#allocation5 + $0x2a8] sm:$0xff]  ;;  %v2704_v7 = vcombine.low %v322_v57, %v326_v60 }
  0x8d   :  { %2022 = vmatpush1.bf16.msra.mxu0 %v2640_v1  ;;  %v2705_v1 = vcombine.high %v322_v57, %v326_v60  ;;  %v154_v5 = vld [vmem:[#allocation5 + $0x248] sm:$0xff]  ;;  %v2544_v8 = vcombine.low %v162_v61, %v166_v62  ;;  %v267_v57 = vld [vmem:[#allocation5 + $0x5d0] sm:$0xff] }
  0x8e   :  { %1989 = vmatpush1.bf16.msra.mxu1 %v2480_v2  ;;  %2023 = vmatprep.subr.bf16.mxu0 %v2633_v3  ;;  %v2545_v2 = vcombine.high %v162_v61, %v166_v62  ;;  %v314_v3 = vld [vmem:[#allocation5 + $0x748] sm:$0xff]  ;;  %v271_v60 = vld [vmem:[#allocation5 + $0x5f0] sm:$0xff] }
  0x8f   :  { %1990 = vmatprep.subr.bf16.mxu1 %v2473_v4  ;;  %v318_v4 = vld [vmem:[#allocation5 + $0x768] sm:$0xff] }
  0x90   :  { %v158_v6 = vld [vmem:[#allocation5 + $0x268] sm:$0xff]  ;;  %v2696_v15 = vcombine.low %v314_v3, %v318_v4 }
  0x91   :  { %2024 = vmatpush1.bf16.msra.mxu0 %v2632_v9  ;;  %v2697_v9 = vcombine.high %v314_v3, %v318_v4  ;;  %v146_v13 = vld [vmem:[#allocation5 + $0x208] sm:$0xff]  ;;  %v2536_v17 = vcombine.low %v154_v5, %v158_v6  ;;  %v259_v3 = vld [vmem:[#allocation5 + $0x590] sm:$0xff] }
  0x92   :  { %1991 = vmatpush1.bf16.msra.mxu1 %v2472_v10  ;;  %2025 = vmatprep.subr.bf16.mxu0 %v2625_v11  ;;  %v2537_v10 = vcombine.high %v154_v5, %v158_v6  ;;  %v306_v11 = vld [vmem:[#allocation5 + $0x708] sm:$0xff]  ;;  %v263_v4 = vld [vmem:[#allocation5 + $0x5b0] sm:$0xff]  ;;  %v2650_v6 = vcombine.low %v267_v57, %v271_v60 }
  0x93   :  { %1992 = vmatprep.subr.bf16.mxu1 %v2465_v12  ;;  %v310_v12 = vld [vmem:[#allocation5 + $0x728] sm:$0xff] }
  0x94   :  { %v150_v14 = vld [vmem:[#allocation5 + $0x228] sm:$0xff]  ;;  %v2688_v25 = vcombine.low %v306_v11, %v310_v12 }
  0x95   :  { %2026 = vmatpush1.bf16.msra.mxu0 %v2624_v18  ;;  %v2689_v18 = vcombine.high %v306_v11, %v310_v12  ;;  %v362_v23 = vld [vmem:[#allocation5 + $0x8c8] sm:$0xff]  ;;  %v2528_v26 = vcombine.low %v146_v13, %v150_v14  ;;  %v251_v11 = vld [vmem:[#allocation5 + $0x550] sm:$0xff] }
  0x96   :  { %1993 = vmatpush1.bf16.msra.mxu1 %v2464_v20  ;;  %2027 = vmatprep.subr.bf16.mxu0 %v2617_v21  ;;  %v2529_v20 = vcombine.high %v146_v13, %v150_v14  ;;  %v298_v21 = vld [vmem:[#allocation5 + $0x6c8] sm:$0xff]  ;;  %v255_v12 = vld [vmem:[#allocation5 + $0x570] sm:$0xff]  ;;  %v2642_v14 = vcombine.low %v259_v3, %v263_v4 }
  0x97   :  { %1994 = vmatprep.subr.bf16.mxu1 %v2585_v22  ;;  %v302_v22 = vld [vmem:[#allocation5 + $0x6e8] sm:$0xff] }
  0x98   :  { %v366_v24 = vld [vmem:[#allocation5 + $0x8e8] sm:$0xff]  ;;  %v2680_v33 = vcombine.low %v298_v21, %v302_v22 }
  0x99   :  { %2028 = vmatpush1.bf16.msra.mxu0 %v2616_v27  ;;  %v2681_v27 = vcombine.high %v298_v21, %v302_v22  ;;  %v354_v31 = vld [vmem:[#allocation5 + $0x888] sm:$0xff]  ;;  %v2744_v35 = vcombine.low %v362_v23, %v366_v24  ;;  %v243_v21 = vld [vmem:[#allocation5 + $0x510] sm:$0xff] }
  0x9a   :  { %1995 = vmatpush2.bf16.msra.mxu1 %v2584_v28  ;;  %2029 = vmatprep.subr.bf16.mxu0 %v2609_v29  ;;  %v2745_v28 = vcombine.high %v362_v23, %v366_v24  ;;  %v290_v29 = vld [vmem:[#allocation5 + $0x688] sm:$0xff]  ;;  %v247_v22 = vld [vmem:[#allocation5 + $0x530] sm:$0xff]  ;;  %v2634_v24 = vcombine.low %v251_v11, %v255_v12 }
  0x9b   :  { %1996 = vmatprep.subr.bf16.mxu1 %v2577_v30  ;;  %v294_v30 = vld [vmem:[#allocation5 + $0x6a8] sm:$0xff] }
  0x9c   :  { %v358_v32 = vld [vmem:[#allocation5 + $0x8a8] sm:$0xff]  ;;  %v2672_v42 = vcombine.low %v290_v29, %v294_v30 }
  0x9d   :  { %2030 = vmatpush1.bf16.msra.mxu0 %v2608_v36  ;;  %v2673_v36 = vcombine.high %v290_v29, %v294_v30  ;;  %v346_v40 = vld [vmem:[#allocation5 + $0x848] sm:$0xff]  ;;  %v2736_v43 = vcombine.low %v354_v31, %v358_v32  ;;  %v235_v29 = vld [vmem:[#allocation5 + $0x4d0] sm:$0xff] }
  0x9e   :  { %1997 = vmatpush2.bf16.msra.mxu1 %v2576_v37  ;;  %2031 = vmatprep.subr.bf16.mxu0 %v2601_v38  ;;  %v2737_v37 = vcombine.high %v354_v31, %v358_v32  ;;  %v282_v38 = vld [vmem:[#allocation5 + $0x648] sm:$0xff]  ;;  %v239_v30 = vld [vmem:[#allocation5 + $0x4f0] sm:$0xff]  ;;  %v2626_v32 = vcombine.low %v243_v21, %v247_v22 }
  0x9f   :  { %1998 = vmatprep.subr.bf16.mxu1 %v2569_v39  ;;  %v286_v39 = vld [vmem:[#allocation5 + $0x668] sm:$0xff] }
  0xa0   :  { %v350_v41 = vld [vmem:[#allocation5 + $0x868] sm:$0xff]  ;;  %v2664_v50 = vcombine.low %v282_v38, %v286_v39 }
  0xa1   :  { %2032 = vmatpush1.bf16.msra.mxu0 %v2600_v44  ;;  %v2665_v44 = vcombine.high %v282_v38, %v286_v39  ;;  %v338_v48 = vld [vmem:[#allocation5 + $0x808] sm:$0xff]  ;;  %v2728_v51 = vcombine.low %v346_v40, %v350_v41  ;;  %v227_v38 = vld [vmem:[#allocation5 + $0x490] sm:$0xff] }
  0xa2   :  { %1999 = vmatpush2.bf16.msra.mxu1 %v2568_v45  ;;  %2033 = vmatprep.subr.bf16.mxu0 %v2593_v46  ;;  %v2729_v45 = vcombine.high %v346_v40, %v350_v41  ;;  %v274_v46 = vld [vmem:[#allocation5 + $0x608] sm:$0xff]  ;;  %v231_v39 = vld [vmem:[#allocation5 + $0x4b0] sm:$0xff]  ;;  %v2618_v41 = vcombine.low %v235_v29, %v239_v30 }
  0xa3   :  { %2000 = vmatprep.subr.bf16.mxu1 %v2561_v47  ;;  %v278_v47 = vld [vmem:[#allocation5 + $0x628] sm:$0xff] }
  0xa4   :  { %v342_v49 = vld [vmem:[#allocation5 + $0x828] sm:$0xff]  ;;  %v2656_v61 = vcombine.low %v274_v46, %v278_v47 }
  0xa5   :  { %2034 = vmatpush1.bf16.msra.mxu0 %v2592_v53  ;;  %v2657_v53 = vcombine.high %v274_v46, %v278_v47  ;;  %v2720_v62 = vcombine.low %v338_v48, %v342_v49  ;;  %v219_v46 = vld [vmem:[#allocation5 + $0x450] sm:$0xff] }
  0xa6   :  { %2001 = vmatpush2.bf16.msra.mxu1 %v2560_v54  ;;  %2035 = vmatprep.subr.bf16.mxu0 %v2713_v55  ;;  %v2721_v54 = vcombine.high %v338_v48, %v342_v49  ;;  %v139_v55 = vld [vmem:[#allocation5 + $0x1d0] sm:$0xff]  ;;  %v2610_v49 = vcombine.low %v227_v38, %v231_v39 }
  0xa7   :  { %2002 = vmatprep.subr.bf16.mxu1 %v2553_v56  ;;  %v143_v56 = vld [vmem:[#allocation5 + $0x1f0] sm:$0xff] }
  0xa8   :  { %v2522_v5 = vcombine.low %v139_v55, %v143_v56  ;;  %v223_v47 = vld [vmem:[#allocation5 + $0x470] sm:$0xff] }
  0xa9   :  { %2036 = vmatpush2.bf16.msra.mxu0 %v2712_v63  ;;  %v2523_v63 = vcombine.high %v139_v55, %v143_v56  ;;  %v211_v55 = vld [vmem:[#allocation5 + $0x410] sm:$0xff] }
  0xaa   :  { %2003 = vmatpush2.bf16.msra.mxu1 %v2552_v0  ;;  %2037 = vmatprep.subr.bf16.mxu0 %v2705_v1  ;;  %v2651_v0 = vcombine.high %v267_v57, %v271_v60  ;;  %v131_v1 = vld [vmem:[#allocation5 + $0x190] sm:$0xff]  ;;  %v2602_v60 = vcombine.low %v219_v46, %v223_v47 }
  0xab   :  { %2004 = vmatprep.subr.bf16.mxu1 %v2545_v2  ;;  %v135_v2 = vld [vmem:[#allocation5 + $0x1b0] sm:$0xff] }
  0xac   :  { %v2514_v13 = vcombine.low %v131_v1, %v135_v2  ;;  %v215_v56 = vld [vmem:[#allocation5 + $0x430] sm:$0xff] }
  0xad   :  { %2038 = vmatpush2.bf16.msra.mxu0 %v2704_v7  ;;  %v2515_v7 = vcombine.high %v131_v1, %v135_v2  ;;  %v331_v1 = vld [vmem:[#allocation5 + $0x7d0] sm:$0xff] }
  0xae   :  { %2005 = vmatpush2.bf16.msra.mxu1 %v2544_v8  ;;  %2039 = vmatprep.subr.bf16.mxu0 %v2697_v9  ;;  %v2643_v8 = vcombine.high %v259_v3, %v263_v4  ;;  %v123_v9 = vld [vmem:[#allocation5 + $0x150] sm:$0xff]  ;;  %v2594_v4 = vcombine.low %v211_v55, %v215_v56 }
  0xaf   :  { %2006 = vmatprep.subr.bf16.mxu1 %v2537_v10  ;;  %v127_v10 = vld [vmem:[#allocation5 + $0x170] sm:$0xff] }
  0xb0   :  { %v2506_v23 = vcombine.low %v123_v9, %v127_v10  ;;  %v335_v2 = vld [vmem:[#allocation5 + $0x7f0] sm:$0xff] }
  0xb1   :  { %2040 = vmatpush2.bf16.msra.mxu0 %v2696_v15  ;;  %v2507_v15 = vcombine.high %v123_v9, %v127_v10  ;;  %v323_v9 = vld [vmem:[#allocation5 + $0x790] sm:$0xff] }
  0xb2   :  { %2007 = vmatpush2.bf16.msra.mxu1 %v2536_v17  ;;  %2041 = vmatprep.subr.bf16.mxu0 %v2689_v18  ;;  %v2635_v17 = vcombine.high %v251_v11, %v255_v12  ;;  %v115_v18 = vld [vmem:[#allocation5 + $0x110] sm:$0xff]  ;;  %v2714_v12 = vcombine.low %v331_v1, %v335_v2 }
  0xb3   :  { %2008 = vmatprep.subr.bf16.mxu1 %v2529_v20  ;;  %v119_v20 = vld [vmem:[#allocation5 + $0x130] sm:$0xff] }
  0xb4   :  { %v2498_v31 = vcombine.low %v115_v18, %v119_v20  ;;  %v327_v10 = vld [vmem:[#allocation5 + $0x7b0] sm:$0xff] }
  0xb5   :  { %2042 = vmatpush2.bf16.msra.mxu0 %v2688_v25  ;;  %v2499_v25 = vcombine.high %v115_v18, %v119_v20  ;;  %v315_v18 = vld [vmem:[#allocation5 + $0x750] sm:$0xff] }
  0xb6   :  { %2009 = vmatpush2.bf16.msra.mxu1 %v2528_v26  ;;  %2043 = vmatprep.subr.bf16.mxu0 %v2681_v27  ;;  %v2627_v26 = vcombine.high %v243_v21, %v247_v22  ;;  %v107_v27 = vld [vmem:[#allocation5 + $0xd0] sm:$0xff]  ;;  %v2706_v22 = vcombine.low %v323_v9, %v327_v10 }
  0xb7   :  { %2068 = vmatprep.subr.bf16.mxu1 %v2745_v28  ;;  %v111_v28 = vld [vmem:[#allocation5 + $0xf0] sm:$0xff] }
  0xb8   :  { %v2490_v40 = vcombine.low %v107_v27, %v111_v28  ;;  %v319_v20 = vld [vmem:[#allocation5 + $0x770] sm:$0xff] }
  0xb9   :  { %2011 = vmatmul.mubr.bf16.vlgmr.msra.gmra.mxu1 %v2906_v16  ;;  %2044 = vmatpush2.bf16.msra.mxu0 %v2680_v33  ;;  %v2491_v33 = vcombine.high %v107_v27, %v111_v28  ;;  %v307_v27 = vld [vmem:[#allocation5 + $0x710] sm:$0xff] }
  0xba   :  { %2069 = vmatpush1.bf16.msra.mxu1 %v2744_v35  ;;  %2045 = vmatprep.subr.bf16.mxu0 %v2673_v36  ;;  %v2619_v35 = vcombine.high %v235_v29, %v239_v30  ;;  %v99_v36 = vld [vmem:[#allocation5 + $0x90] sm:$0xff]  ;;  %v2698_v30 = vcombine.low %v315_v18, %v319_v20 }
  0xbb   :  { %2070 = vmatprep.subr.bf16.mxu1 %v2737_v37  ;;  %2092 = vmatprep.mubr.bf16.mxu1 %v2857_v34  ;;  %v103_v37 = vld [vmem:[#allocation5 + $0xb0] sm:$0xff] }
  0xbc   :  { %v2482_v48 = vcombine.low %v99_v36, %v103_v37  ;;  %v311_v28 = vld [vmem:[#allocation5 + $0x730] sm:$0xff] }
  0xbd   :  { %2046 = vmatpush2.bf16.msra.mxu0 %v2672_v42  ;;  %v2483_v42 = vcombine.high %v99_v36, %v103_v37  ;;  %v299_v36 = vld [vmem:[#allocation5 + $0x6d0] sm:$0xff] }
  0xbe   :  { %2071 = vmatpush1.bf16.msra.mxu1 %v2736_v43  ;;  %2047 = vmatprep.subr.bf16.mxu0 %v2665_v44  ;;  %v2611_v43 = vcombine.high %v227_v38, %v231_v39  ;;  %v91_v44 = vld [vmem:[#allocation5 + $0x50] sm:$0xff]  ;;  %v2690_v39 = vcombine.low %v307_v27, %v311_v28 }
  0xbf   :  { %2072 = vmatprep.subr.bf16.mxu1 %v2729_v45  ;;  %v95_v45 = vld [vmem:[#allocation5 + $0x70] sm:$0xff] }
  0xc0   :  { %v2474_v57 = vcombine.low %v91_v44, %v95_v45  ;;  %v303_v37 = vld [vmem:[#allocation5 + $0x6f0] sm:$0xff] }
  0xc1   :  { %2048 = vmatpush2.bf16.msra.mxu0 %v2664_v50  ;;  %v2475_v50 = vcombine.high %v91_v44, %v95_v45  ;;  %v291_v44 = vld [vmem:[#allocation5 + $0x690] sm:$0xff] }
  0xc2   :  { %2073 = vmatpush1.bf16.msra.mxu1 %v2728_v51  ;;  %2049 = vmatprep.subr.bf16.mxu0 %v2657_v53  ;;  %v2603_v51 = vcombine.high %v219_v46, %v223_v47  ;;  %v83_v53 = vld [vmem:[#allocation5 + $0x10] sm:$0xff]  ;;  %v2682_v47 = vcombine.low %v299_v36, %v303_v37 }
  0xc3   :  { %2074 = vmatprep.subr.bf16.mxu1 %v2721_v54  ;;  %v87_v54 = vld [vmem:[#allocation5 + $0x30] sm:$0xff] }
  0xc4   :  { %v2466_v3 = vcombine.low %v83_v53, %v87_v54  ;;  %v295_v45 = vld [vmem:[#allocation5 + $0x6b0] sm:$0xff] }
  0xc5   :  { %2050 = vmatpush2.bf16.msra.mxu0 %v2656_v61  ;;  %v2467_v61 = vcombine.high %v83_v53, %v87_v54  ;;  %v283_v53 = vld [vmem:[#allocation5 + $0x650] sm:$0xff] }
  0xc6   :  { %2075 = vmatpush1.bf16.msra.mxu1 %v2720_v62  ;;  %2101 = vmatprep.subr.bf16.mxu0 %v2523_v63  ;;  %v2595_v62 = vcombine.high %v211_v55, %v215_v56  ;;  %v203_v63 = vld [vmem:[#allocation5 + $0x3d0] sm:$0xff]  ;;  %v2674_v56 = vcombine.low %v291_v44, %v295_v45 }
  0xc7   :  { %2142 = vmatprep.subr.bf16.mxu1 %v2651_v0  ;;  %v207_v0 = vld [vmem:[#allocation5 + $0x3f0] sm:$0xff] }
  0xc8   :  { %2052 = vmatmul.mubr.bf16.vlgmr.msra.gmra.mxu0 %v2908_v19  ;;  %v2586_v11 = vcombine.low %v203_v63, %v207_v0  ;;  %v287_v54 = vld [vmem:[#allocation5 + $0x670] sm:$0xff] }
  0xc9   :  { %2751 = vmatmul.mubr.msk.bf16.vlgmr.msra.gmra.mxu1 %vm1851_vm0, %v2914_v52  ;;  %2102 = vmatpush1.bf16.msra.mxu0 %v2522_v5  ;;  %v2587_v5 = vcombine.high %v203_v63, %v207_v0  ;;  %v275_v63 = vld [vmem:[#allocation5 + $0x610] sm:$0xff] }
  0xca   :  { %2143 = vmatpush1.bf16.msra.mxu1 %v2650_v6  ;;  %2103 = vmatprep.subr.bf16.mxu0 %v2515_v7  ;;  %v2715_v6 = vcombine.high %v331_v1, %v335_v2  ;;  %v195_v7 = vld [vmem:[#allocation5 + $0x390] sm:$0xff]  ;;  %v2666_v2 = vcombine.low %v283_v53, %v287_v54 }
  0xcb   :  { %2144 = vmatprep.subr.bf16.mxu1 %v2643_v8  ;;  %2133 = vmatprep.mubr.bf16.mxu0 %v2900_v58  ;;  %v199_v8 = vld [vmem:[#allocation5 + $0x3b0] sm:$0xff] }
  0xcc   :  { %2174 = vmatprep.mubr.bf16.mxu1 %v2902_v59  ;;  %v2578_v21 = vcombine.low %v195_v7, %v199_v8  ;;  %v279_v0 = vld [vmem:[#allocation5 + $0x630] sm:$0xff] }
  0xcd   :  { %2104 = vmatpush1.bf16.msra.mxu0 %v2514_v13  ;;  %v2579_v13 = vcombine.high %v195_v7, %v199_v8  ;;  %v140_v7 = vld [vmem:[#allocation5 + $0x1d8] sm:$0xff] }
  0xce   :  { %2145 = vmatpush1.bf16.msra.mxu1 %v2642_v14  ;;  %2105 = vmatprep.subr.bf16.mxu0 %v2507_v15  ;;  %v2707_v14 = vcombine.high %v323_v9, %v327_v10  ;;  %v187_v15 = vld [vmem:[#allocation5 + $0x350] sm:$0xff]  ;;  %v144_v8 = vld [vmem:[#allocation5 + $0x1f8] sm:$0xff]  ;;  %v2658_v10 = vcombine.low %v275_v63, %v279_v0 }
  0xcf   :  { %2146 = vmatprep.subr.bf16.mxu1 %v2635_v17  ;;  %v191_v17 = vld [vmem:[#allocation5 + $0x370] sm:$0xff] }
  0xd0   :  { %v2570_v29 = vcombine.low %v187_v15, %v191_v17 }
  0xd1   :  { %2106 = vmatpush1.bf16.msra.mxu0 %v2506_v23  ;;  %v2571_v23 = vcombine.high %v187_v15, %v191_v17  ;;  %v132_v15 = vld [vmem:[#allocation5 + $0x198] sm:$0xff] }
  0xd2   :  { %2147 = vmatpush1.bf16.msra.mxu1 %v2634_v24  ;;  %2107 = vmatprep.subr.bf16.mxu0 %v2499_v25  ;;  %v2699_v24 = vcombine.high %v315_v18, %v319_v20  ;;  %v179_v25 = vld [vmem:[#allocation5 + $0x310] sm:$0xff]  ;;  %v136_v17 = vld [vmem:[#allocation5 + $0x1b8] sm:$0xff]  ;;  %v2524_v20 = vcombine.low %v140_v7, %v144_v8 }
  0xd3   :  { %2148 = vmatprep.subr.bf16.mxu1 %v2627_v26  ;;  %v183_v26 = vld [vmem:[#allocation5 + $0x330] sm:$0xff] }
  0xd4   :  { %v2562_v38 = vcombine.low %v179_v25, %v183_v26 }
  0xd5   :  { %2108 = vmatpush1.bf16.msra.mxu0 %v2498_v31  ;;  %v2563_v31 = vcombine.high %v179_v25, %v183_v26  ;;  %v124_v25 = vld [vmem:[#allocation5 + $0x158] sm:$0xff] }
  0xd6   :  { %2149 = vmatpush1.bf16.msra.mxu1 %v2626_v32  ;;  %2109 = vmatprep.subr.bf16.mxu0 %v2491_v33  ;;  %v2691_v32 = vcombine.high %v307_v27, %v311_v28  ;;  %v171_v33 = vld [vmem:[#allocation5 + $0x2d0] sm:$0xff]  ;;  %v128_v26 = vld [vmem:[#allocation5 + $0x178] sm:$0xff]  ;;  %v2516_v28 = vcombine.low %v132_v15, %v136_v17 }
  0xd7   :  { %2150 = vmatprep.subr.bf16.mxu1 %v2619_v35  ;;  %v175_v35 = vld [vmem:[#allocation5 + $0x2f0] sm:$0xff] }
  0xd8   :  { %v2554_v46 = vcombine.low %v171_v33, %v175_v35 }
  0xd9   :  { %2110 = vmatpush1.bf16.msra.mxu0 %v2490_v40  ;;  %v2555_v40 = vcombine.high %v171_v33, %v175_v35  ;;  %v116_v33 = vld [vmem:[#allocation5 + $0x118] sm:$0xff] }
  0xda   :  { %2151 = vmatpush1.bf16.msra.mxu1 %v2618_v41  ;;  %2111 = vmatprep.subr.bf16.mxu0 %v2483_v42  ;;  %v2683_v41 = vcombine.high %v299_v36, %v303_v37  ;;  %v163_v42 = vld [vmem:[#allocation5 + $0x290] sm:$0xff]  ;;  %v120_v35 = vld [vmem:[#allocation5 + $0x138] sm:$0xff]  ;;  %v2508_v37 = vcombine.low %v124_v25, %v128_v26 }
  0xdb   :  { %2152 = vmatprep.subr.bf16.mxu1 %v2611_v43  ;;  %v167_v43 = vld [vmem:[#allocation5 + $0x2b0] sm:$0xff] }
  0xdc   :  { %v2546_v55 = vcombine.low %v163_v42, %v167_v43 }
  0xdd   :  { %2112 = vmatpush1.bf16.msra.mxu0 %v2482_v48  ;;  %v2547_v48 = vcombine.high %v163_v42, %v167_v43  ;;  %v108_v42 = vld [vmem:[#allocation5 + $0xd8] sm:$0xff] }
  0xde   :  { %2153 = vmatpush1.bf16.msra.mxu1 %v2610_v49  ;;  %2113 = vmatprep.subr.bf16.mxu0 %v2475_v50  ;;  %v2675_v49 = vcombine.high %v291_v44, %v295_v45  ;;  %v155_v50 = vld [vmem:[#allocation5 + $0x250] sm:$0xff]  ;;  %v112_v43 = vld [vmem:[#allocation5 + $0xf8] sm:$0xff]  ;;  %v2500_v45 = vcombine.low %v116_v33, %v120_v35 }
  0xdf   :  { %2154 = vmatprep.subr.bf16.mxu1 %v2603_v51  ;;  %v159_v51 = vld [vmem:[#allocation5 + $0x270] sm:$0xff] }
  0xe0   :  { %v2538_v1 = vcombine.low %v155_v50, %v159_v51 }
  0xe1   :  { %2114 = vmatpush1.bf16.msra.mxu0 %v2474_v57  ;;  %v2539_v57 = vcombine.high %v155_v50, %v159_v51  ;;  %v104_v50 = vld [vmem:[#allocation5 + $0xb8] sm:$0xff] }
  0xe2   :  { %2155 = vmatpush1.bf16.msra.mxu1 %v2602_v60  ;;  %2115 = vmatprep.subr.bf16.mxu0 %v2467_v61  ;;  %v2667_v60 = vcombine.high %v283_v53, %v287_v54  ;;  %v147_v61 = vld [vmem:[#allocation5 + $0x210] sm:$0xff]  ;;  %v2492_v53 = vcombine.low %v108_v42, %v112_v43 }
  0xe3   :  { %2156 = vmatprep.subr.bf16.mxu1 %v2595_v62  ;;  %v151_v62 = vld [vmem:[#allocation5 + $0x230] sm:$0xff] }
  0xe4   :  { %v2530_v9 = vcombine.low %v147_v61, %v151_v62 }
  0xe5   :  { %2116 = vmatpush1.bf16.msra.mxu0 %v2466_v3  ;;  %v2531_v3 = vcombine.high %v147_v61, %v151_v62  ;;  %v96_v61 = vld [vmem:[#allocation5 + $0x78] sm:$0xff] }
  0xe6   :  { %2157 = vmatpush1.bf16.msra.mxu1 %v2594_v4  ;;  %2117 = vmatprep.subr.bf16.mxu0 %v2587_v5  ;;  %v2659_v4 = vcombine.high %v275_v63, %v279_v0  ;;  %v363_v5 = vld [vmem:[#allocation5 + $0x8d0] sm:$0xff] }
  0xe7   :  { %2158 = vmatprep.subr.bf16.mxu1 %v2715_v6  ;;  %v367_v6 = vld [vmem:[#allocation5 + $0x8f0] sm:$0xff] }
  0xe8   :  { %v2746_v18 = vcombine.low %v363_v5, %v367_v6 }
  0xe9   :  { %2118 = vmatpush2.bf16.msra.mxu0 %v2586_v11  ;;  %v2747_v11 = vcombine.high %v363_v5, %v367_v6  ;;  %v88_v5 = vld [vmem:[#allocation5 + $0x38] sm:$0xff] }
  0xea   :  { %2159 = vmatpush2.bf16.msra.mxu1 %v2714_v12  ;;  %2119 = vmatprep.subr.bf16.mxu0 %v2579_v13  ;;  %v2525_v12 = vcombine.high %v140_v7, %v144_v8  ;;  %v355_v13 = vld [vmem:[#allocation5 + $0x890] sm:$0xff] }
  0xeb   :  { %2160 = vmatprep.subr.bf16.mxu1 %v2707_v14  ;;  %v359_v14 = vld [vmem:[#allocation5 + $0x8b0] sm:$0xff] }
  0xec   :  { %v2738_v27 = vcombine.low %v355_v13, %v359_v14 }
  0xed   :  { %2120 = vmatpush2.bf16.msra.mxu0 %v2578_v21  ;;  %v2739_v21 = vcombine.high %v355_v13, %v359_v14 }
  0xee   :  { %2161 = vmatpush2.bf16.msra.mxu1 %v2706_v22  ;;  %2121 = vmatprep.subr.bf16.mxu0 %v2571_v23  ;;  %v2517_v22 = vcombine.high %v132_v15, %v136_v17  ;;  %v347_v23 = vld [vmem:[#allocation5 + $0x850] sm:$0xff] }
  0xef   :  { %2162 = vmatprep.subr.bf16.mxu1 %v2699_v24  ;;  %v351_v24 = vld [vmem:[#allocation5 + $0x870] sm:$0xff] }
  0xf0   :  { %v2730_v36 = vcombine.low %v347_v23, %v351_v24 }
  0xf1   :  { %2122 = vmatpush2.bf16.msra.mxu0 %v2570_v29  ;;  %v2731_v29 = vcombine.high %v347_v23, %v351_v24 }
  0xf2   :  { %2163 = vmatpush2.bf16.msra.mxu1 %v2698_v30  ;;  %2123 = vmatprep.subr.bf16.mxu0 %v2563_v31  ;;  %v2509_v30 = vcombine.high %v124_v25, %v128_v26  ;;  %v339_v31 = vld [vmem:[#allocation5 + $0x810] sm:$0xff] }
  0xf3   :  { %2164 = vmatprep.subr.bf16.mxu1 %v2691_v32  ;;  %v343_v32 = vld [vmem:[#allocation5 + $0x830] sm:$0xff] }
  0xf4   :  { %v2722_v44 = vcombine.low %v339_v31, %v343_v32 }
  0xf5   :  { %2124 = vmatpush2.bf16.msra.mxu0 %v2562_v38  ;;  %v2723_v38 = vcombine.high %v339_v31, %v343_v32  ;;  %v371_v32 = vlaneseq }
  0xf6   :  { %2165 = vmatpush2.bf16.msra.mxu1 %v2690_v39  ;;  %2125 = vmatprep.subr.bf16.mxu0 %v2555_v40  ;;  %v2501_v39 = vcombine.high %v116_v33, %v120_v35  ;;  %v268_v40 = vld [vmem:[#allocation5 + $0x5d8] sm:$0xff] }
  0xf7   :  { %2166 = vmatprep.subr.bf16.mxu1 %v2683_v41  ;;  %v272_v41 = vld [vmem:[#allocation5 + $0x5f8] sm:$0xff] }
  0xf8   :  { %v2652_v51 = vcombine.low %v268_v40, %v272_v41 }
  0xf9   :  { %2126 = vmatpush2.bf16.msra.mxu0 %v2554_v46  ;;  %v2653_v46 = vcombine.high %v268_v40, %v272_v41  ;;  %v184_v40 = vld [vmem:[#allocation5 + $0x338] sm:$0xff] }
  0xfa   :  { %2167 = vmatpush2.bf16.msra.mxu1 %v2682_v47  ;;  %2127 = vmatprep.subr.bf16.mxu0 %v2547_v48  ;;  %v260_v47 = vld [vmem:[#allocation5 + $0x598] sm:$0xff] }
  0xfb   :  { %2168 = vmatprep.subr.bf16.mxu1 %v2675_v49  ;;  %v264_v48 = vld [vmem:[#allocation5 + $0x5b8] sm:$0xff] }
  0xfc   :  { %v100_v49 = vld [vmem:[#allocation5 + $0x98] sm:$0xff]  ;;  %v2645_v54 = vcombine.high %v260_v47, %v264_v48  ;;  %v2644_v62 = vcombine.low %v260_v47, %v264_v48 }
  0xfd   :  { %2128 = vmatpush2.bf16.msra.mxu0 %v2546_v55  ;;  %v2485_v55 = vcombine.high %v100_v49, %v104_v50  ;;  %v2484_v63 = vcombine.low %v100_v49, %v104_v50  ;;  %v172_v47 = vld [vmem:[#allocation5 + $0x2d8] sm:$0xff] }
  0xfe   :  { %2169 = vmatpush2.bf16.msra.mxu1 %v2674_v56  ;;  %2129 = vmatprep.subr.bf16.mxu0 %v2539_v57  ;;  %v252_v56 = vld [vmem:[#allocation5 + $0x558] sm:$0xff] }
  0xff   :  { %2170 = vmatprep.subr.bf16.mxu1 %v2667_v60  ;;  %v256_v57 = vld [vmem:[#allocation5 + $0x578] sm:$0xff] }
 0x100   :  { %v92_v60 = vld [vmem:[#allocation5 + $0x58] sm:$0xff]  ;;  %v2637_v0 = vcombine.high %v252_v56, %v256_v57  ;;  %v2636_v6 = vcombine.low %v252_v56, %v256_v57 }
 0x101   :  { %2130 = vmatpush2.bf16.msra.mxu0 %v2538_v1  ;;  %v2477_v1 = vcombine.high %v92_v60, %v96_v61  ;;  %v2476_v7 = vcombine.low %v92_v60, %v96_v61  ;;  %v176_v48 = vld [vmem:[#allocation5 + $0x2f8] sm:$0xff] }
 0x102   :  { %2171 = vmatpush2.bf16.msra.mxu1 %v2666_v2  ;;  %2131 = vmatprep.subr.bf16.mxu0 %v2531_v3  ;;  %v244_v2 = vld [vmem:[#allocation5 + $0x518] sm:$0xff] }
 0x103   :  { %2172 = vmatprep.subr.bf16.mxu1 %v2659_v4  ;;  %v248_v3 = vld [vmem:[#allocation5 + $0x538] sm:$0xff] }
 0x104   :  { %v84_v4 = vld [vmem:[#allocation5 + $0x18] sm:$0xff]  ;;  %v2629_v8 = vcombine.high %v244_v2, %v248_v3  ;;  %v2628_v13 = vcombine.low %v244_v2, %v248_v3 }
 0x105   :  { %2132 = vmatpush2.bf16.msra.mxu0 %v2530_v9  ;;  %v2469_v9 = vcombine.high %v84_v4, %v88_v5  ;;  %v2468_v14 = vcombine.low %v84_v4, %v88_v5  ;;  %v324_v57 = vld [vmem:[#allocation5 + $0x798] sm:$0xff] }
 0x106   :  { %2173 = vmatpush2.bf16.msra.mxu1 %v2658_v10  ;;  %2191 = vmatprep.subr.bf16.mxu0 %v2747_v11  ;;  %v236_v10 = vld [vmem:[#allocation5 + $0x4d8] sm:$0xff] }
 0x107   :  { %2224 = vmatprep.subr.bf16.mxu1 %v2525_v12  ;;  %v204_v11 = vld [vmem:[#allocation5 + $0x3d8] sm:$0xff] }
 0x108   :  { %2134 = vmatmul.mubr.bf16.vlgmr.msra.gmra.mxu0 %v2906_v16  ;;  %v208_v12 = vld [vmem:[#allocation5 + $0x3f8] sm:$0xff] }
 0x109   :  { %2175 = vmatmul.mubr.bf16.vlgmr.msra.gmra.mxu1 %v2908_v19  ;;  %2192 = vmatpush1.bf16.msra.mxu0 %v2746_v18  ;;  %v2589_v17 = vcombine.high %v204_v11, %v208_v12  ;;  %v228_v18 = vld [vmem:[#allocation5 + $0x498] sm:$0xff]  ;;  %v2588_v24 = vcombine.low %v204_v11, %v208_v12 }
 0x10a   :  { %2225 = vmatpush1.bf16.msra.mxu1 %v2524_v20  ;;  %2193 = vmatprep.subr.bf16.mxu0 %v2739_v21  ;;  %v232_v20 = vld [vmem:[#allocation5 + $0x4b8] sm:$0xff] }
 0x10b   :  { %2226 = vmatprep.subr.bf16.mxu1 %v2517_v22  ;;  %2215 = vmatprep.mubr.bf16.mxu0 %v2857_v34  ;;  %v196_v21 = vld [vmem:[#allocation5 + $0x398] sm:$0xff]  ;;  %v2613_v25 = vcombine.high %v228_v18, %v232_v20  ;;  %v2612_v31 = vcombine.low %v228_v18, %v232_v20 }
 0x10c   :  { %2256 = vmatprep.mubr.bf16.mxu1 %v2900_v58  ;;  %v2493_v58 = vcombine.high %v108_v42, %v112_v43  ;;  %v200_v22 = vld [vmem:[#allocation5 + $0x3b8] sm:$0xff]  ;;  %v2933_v42 = vshrl.u32 %v371_v32, 7 }
 0x10d   :  { %2194 = vmatpush1.bf16.msra.mxu0 %v2738_v27  ;;  %v2581_v26 = vcombine.high %v196_v21, %v200_v22  ;;  %v220_v27 = vld [vmem:[#allocation5 + $0x458] sm:$0xff]  ;;  %v2580_v33 = vcombine.low %v196_v21, %v200_v22 }
 0x10e   :  { %2227 = vmatpush1.bf16.msra.mxu1 %v2516_v28  ;;  %2195 = vmatprep.subr.bf16.mxu0 %v2731_v29  ;;  %v224_v28 = vld [vmem:[#allocation5 + $0x478] sm:$0xff]  ;;  %v373_v50 = vsub.s32 0, %v2933_v42  ;;  %v377_v56 = vsub.s32 1, %v2933_v42 }
 0x10f   :  { %2228 = vmatprep.subr.bf16.mxu1 %v2509_v30  ;;  %v188_v29 = vld [vmem:[#allocation5 + $0x358] sm:$0xff]  ;;  %v2605_v35 = vcombine.high %v220_v27, %v224_v28  ;;  %v2604_v41 = vcombine.low %v220_v27, %v224_v28 }
 0x110   :  { %v192_v30 = vld [vmem:[#allocation5 + $0x378] sm:$0xff] }
 0x111   :  { %2196 = vmatpush1.bf16.msra.mxu0 %v2730_v36  ;;  %v2573_v36 = vcombine.high %v188_v29, %v192_v30  ;;  %v2572_v43 = vcombine.low %v188_v29, %v192_v30  ;;  %v328_v60 = vld [vmem:[#allocation5 + $0x7b8] sm:$0xff] }
 0x112   :  { %2229 = vmatpush1.bf16.msra.mxu1 %v2508_v37  ;;  %2197 = vmatprep.subr.bf16.mxu0 %v2723_v38  ;;  %v212_v37 = vld [vmem:[#allocation5 + $0x418] sm:$0xff]  ;;  %v2709_v2 = vcombine.high %v324_v57, %v328_v60  ;;  %v2708_v11 = vcombine.low %v324_v57, %v328_v60 }
 0x113   :  { %2230 = vmatprep.subr.bf16.mxu1 %v2501_v39  ;;  %v216_v38 = vld [vmem:[#allocation5 + $0x438] sm:$0xff] }
 0x114   :  { %v180_v39 = vld [vmem:[#allocation5 + $0x318] sm:$0xff]  ;;  %v2596_v49 = vcombine.low %v212_v37, %v216_v38 }
 0x115   :  { %2198 = vmatpush1.bf16.msra.mxu0 %v2722_v44  ;;  %v2597_v44 = vcombine.high %v212_v37, %v216_v38  ;;  %v164_v61 = vld [vmem:[#allocation5 + $0x298] sm:$0xff] }
 0x116   :  { %2231 = vmatpush1.bf16.msra.mxu1 %v2500_v45  ;;  %2265 = vmatprep.subr.bf16.mxu0 %v2653_v46  ;;  %v2565_v45 = vcombine.high %v180_v39, %v184_v40  ;;  %v332_v46 = vld [vmem:[#allocation5 + $0x7d8] sm:$0xff] }
 0x117   :  { %2232 = vmatprep.subr.bf16.mxu1 %v2493_v58  ;;  %v336_v58 = vld [vmem:[#allocation5 + $0x7f8] sm:$0xff] }
 0x118   :  { %2752 = vmatmul.mubr.msk.bf16.vlgmr.msra.gmra.mxu0 %vm1851_vm0, %v2914_v52  ;;  %v316_v5 = vld [vmem:[#allocation5 + $0x758] sm:$0xff] }
 0x119   :  { %2266 = vmatpush1.bf16.msra.mxu0 %v2652_v51  ;;  %2297 = vmatprep.mubr.bf16.mxu0 %v2902_v59  ;;  %v240_v59 = vld [vmem:[#allocation5 + $0x4f8] sm:$0xff]  ;;  %v2564_v51 = vcombine.low %v180_v39, %v184_v40 }
 0x11a   :  { %2233 = vmatpush1.bf16.msra.mxu1 %v2492_v53  ;;  %2267 = vmatprep.subr.bf16.mxu0 %v2645_v54  ;;  %v2621_v15 = vcombine.high %v236_v10, %v240_v59  ;;  %v2620_v23 = vcombine.low %v236_v10, %v240_v59  ;;  %v2936_v53 = vld [vmem:[#allocation7] sm:$0xff]  ;;  %v2717_v54 = vcombine.high %v332_v46, %v336_v58  ;;  %v308_v21 = vld [vmem:[#allocation5 + $0x718] sm:$0xff] }
 0x11b   :  { %2234 = vmatprep.subr.bf16.mxu1 %v2485_v55  ;;  %v2557_v55 = vcombine.high %v172_v47, %v176_v48  ;;  %v378_v3 = vrot.slane %v2936_v53, %v377_v56  ;;  %v312_v22 = vld [vmem:[#allocation5 + $0x738] sm:$0xff] }
 0x11c   :  { %v364_v37 = vld [vmem:[#allocation5 + $0x8d8] sm:$0xff]  ;;  %v2692_v39 = vcombine.low %v308_v21, %v312_v22 }
 0x11d   :  { %2268 = vmatpush1.bf16.msra.mxu0 %v2644_v62  ;;  %v168_v62 = vld [vmem:[#allocation5 + $0x2b8] sm:$0xff] }
 0x11e   :  { %2235 = vmatpush1.bf16.msra.mxu1 %v2484_v63  ;;  %2269 = vmatprep.subr.bf16.mxu0 %v2637_v0  ;;  %v374_v63 = vrot.slane %v2936_v53, %v373_v50  ;;  %v2716_v0 = vcombine.low %v332_v46, %v336_v58  ;;  %v2549_v4 = vcombine.high %v164_v61, %v168_v62  ;;  %v368_v38 = vld [vmem:[#allocation5 + $0x8f8] sm:$0xff] }
 0x11f   :  { %2236 = vmatprep.subr.bf16.mxu1 %v2477_v1  ;;  %v2556_v1 = vcombine.low %v172_v47, %v176_v48  ;;  %v356_v46 = vld [vmem:[#allocation5 + $0x898] sm:$0xff]  ;;  %v2748_v48 = vcombine.low %v364_v37, %v368_v38 }
 0x120   :  { %v360_v58 = vld [vmem:[#allocation5 + $0x8b8] sm:$0xff] }
 0x121   :  { %2270 = vmatpush1.bf16.msra.mxu0 %v2636_v6  ;;  %v320_v6 = vld [vmem:[#allocation5 + $0x778] sm:$0xff] }
 0x122   :  { %2237 = vmatpush1.bf16.msra.mxu1 %v2476_v7  ;;  %2271 = vmatprep.subr.bf16.mxu0 %v2629_v8  ;;  %v156_v8 = vld [vmem:[#allocation5 + $0x258] sm:$0xff]  ;;  %v2700_v28 = vcombine.low %v316_v5, %v320_v6 }
 0x123   :  { %2238 = vmatprep.subr.bf16.mxu1 %v2469_v9  ;;  %v160_v9 = vld [vmem:[#allocation5 + $0x278] sm:$0xff] }
 0x124   :  { %v2541_v20 = vcombine.high %v156_v8, %v160_v9  ;;  %v2540_v30 = vcombine.low %v156_v8, %v160_v9  ;;  %v348_v60 = vld [vmem:[#allocation5 + $0x858] sm:$0xff] }
 0x125   :  { %2272 = vmatpush1.bf16.msra.mxu0 %v2628_v13  ;;  %v2548_v13 = vcombine.low %v164_v61, %v168_v62  ;;  %v352_v61 = vld [vmem:[#allocation5 + $0x878] sm:$0xff] }
 0x126   :  { %2239 = vmatpush1.bf16.msra.mxu1 %v2468_v14  ;;  %2273 = vmatprep.subr.bf16.mxu0 %v2621_v15  ;;  %v2701_v14 = vcombine.high %v316_v5, %v320_v6  ;;  %v2733_v5 = vcombine.high %v348_v60, %v352_v61  ;;  %v276_v6 = vld [vmem:[#allocation5 + $0x618] sm:$0xff] }
 0x127   :  { %2240 = vmatprep.subr.bf16.mxu1 %v2589_v17  ;;  %v340_v9 = vld [vmem:[#allocation5 + $0x818] sm:$0xff] }
 0x129   :  { %2274 = vmatpush1.bf16.msra.mxu0 %v2620_v23 }
 0x12a   :  { %2241 = vmatpush2.bf16.msra.mxu1 %v2588_v24  ;;  %2275 = vmatprep.subr.bf16.mxu0 %v2613_v25  ;;  %v148_v24 = vld [vmem:[#allocation5 + $0x218] sm:$0xff] }
 0x12b   :  { %2242 = vmatprep.subr.bf16.mxu1 %v2581_v26  ;;  %v152_v25 = vld [vmem:[#allocation5 + $0x238] sm:$0xff] }
 0x12c   :  { %v2532_v40 = vcombine.low %v148_v24, %v152_v25 }
 0x12d   :  { %2276 = vmatpush1.bf16.msra.mxu0 %v2612_v31  ;;  %v2693_v31 = vcombine.high %v308_v21, %v312_v22 }
 0x12e   :  { %2243 = vmatpush2.bf16.msra.mxu1 %v2580_v33  ;;  %2277 = vmatprep.subr.bf16.mxu0 %v2605_v35  ;;  %v2533_v33 = vcombine.high %v148_v24, %v152_v25  ;;  %v300_v35 = vld [vmem:[#allocation5 + $0x6d8] sm:$0xff] }
 0x12f   :  { %2244 = vmatprep.subr.bf16.mxu1 %v2573_v36  ;;  %v304_v36 = vld [vmem:[#allocation5 + $0x6f8] sm:$0xff] }
 0x130   :  { %v2684_v47 = vcombine.low %v300_v35, %v304_v36 }
 0x131   :  { %2278 = vmatpush1.bf16.msra.mxu0 %v2604_v41  ;;  %v2685_v41 = vcombine.high %v300_v35, %v304_v36  ;;  %v381_v35 = vsub.s32 2, %v2933_v42  ;;  %v385_v36 = vsub.s32 3, %v2933_v42 }
 0x132   :  { %2245 = vmatpush2.bf16.msra.mxu1 %v2572_v43  ;;  %2279 = vmatprep.subr.bf16.mxu0 %v2597_v44  ;;  %v2749_v43 = vcombine.high %v364_v37, %v368_v38  ;;  %v292_v44 = vld [vmem:[#allocation5 + $0x698] sm:$0xff] }
 0x133   :  { %2246 = vmatprep.subr.bf16.mxu1 %v2565_v45  ;;  %v296_v45 = vld [vmem:[#allocation5 + $0x6b8] sm:$0xff]  ;;  %v382_v37 = vrot.slane %v2936_v53, %v381_v35  ;;  %v386_v38 = vrot.slane %v2936_v53, %v385_v36 }
 0x135   :  { %2280 = vmatpush1.bf16.msra.mxu0 %v2596_v49  ;;  %v2677_v49 = vcombine.high %v292_v44, %v296_v45 }
 0x136   :  { %2247 = vmatpush2.bf16.msra.mxu1 %v2564_v51  ;;  %2281 = vmatprep.subr.bf16.mxu0 %v2717_v54  ;;  %v2741_v51 = vcombine.high %v356_v46, %v360_v58  ;;  %v284_v54 = vld [vmem:[#allocation5 + $0x658] sm:$0xff] }
 0x137   :  { %2248 = vmatprep.subr.bf16.mxu1 %v2557_v55  ;;  %v288_v55 = vld [vmem:[#allocation5 + $0x678] sm:$0xff] }
 0x138   :  { %v1889_v7 = vpop.f32.mrf.mxu0 }
 0x139   :  { %v1890_v10 = vadd.f32 %v1889_v7, %v374_v63  ;;  %v1930_v59 = vpop.f32.mrf.mxu1  ;;  %2282 = vmatpush2.bf16.msra.mxu0 %v2716_v0  ;;  %v2676_v63 = vcombine.low %v292_v44, %v296_v45  ;;  %v280_v7 = vld [vmem:[#allocation5 + $0x638] sm:$0xff] }
 0x13a   :  { %2249 = vmatpush2.bf16.msra.mxu1 %v2556_v1  ;;  %v1891_v12 = vpop.f32.mrf.mxu0  ;;  %2283 = vmatprep.subr.bf16.mxu0 %v2709_v2  ;;  %v2740_v1 = vcombine.low %v356_v46, %v360_v58  ;;  %v2669_v2 = vcombine.high %v284_v54, %v288_v55  ;;  %v2660_v22 = vcombine.low %v276_v6, %v280_v7 }
 0x13b   :  { %v1931_v15 = vadd.f32 %v1930_v59, %v1890_v10  ;;  %v1892_v17 = vadd.f32 %v1891_v12, %v378_v3  ;;  %v1932_v18 = vpop.f32.mrf.mxu1  ;;  %2250 = vmatprep.subr.bf16.mxu1 %v2549_v4  ;;  %v344_v10 = vld [vmem:[#allocation5 + $0x838] sm:$0xff] }
 0x13c   :  { %v1893_v23 = vpop.f32.mrf.mxu0 }
 0x13d   :  { %v1933_v26 = vadd.f32 %v1932_v18, %v1892_v17  ;;  %v1934_v27 = vpop.f32.mrf.mxu1  ;;  %2284 = vmatpush2.bf16.msra.mxu0 %v2708_v11  ;;  %v2668_v11 = vcombine.low %v284_v54, %v288_v55  ;;  %v2725_v18 = vcombine.high %v340_v9, %v344_v10  ;;  %v2724_v23 = vcombine.low %v340_v9, %v344_v10 }
 0x13e   :  { %2251 = vmatpush2.bf16.msra.mxu1 %v2548_v13  ;;  %v1894_v29 = vpop.f32.mrf.mxu0  ;;  %2285 = vmatprep.subr.bf16.mxu0 %v2701_v14  ;;  %v2732_v13 = vcombine.low %v348_v60, %v352_v61  ;;  %v2661_v14 = vcombine.high %v276_v6, %v280_v7  ;;  %v389_v9 = vsub.s32 4, %v2933_v42  ;;  %v393_v10 = vsub.s32 5, %v2933_v42 }
 0x13f   :  { %v1935_v32 = vpop.f32.mrf.mxu1  ;;  %2252 = vmatprep.subr.bf16.mxu1 %v2541_v20  ;;  %v2947_v20 = vld [vmem:[#allocation8] sm:$0xff] }
 0x140   :  { %v2392_v24 = vrot.slane %v2947_v20, %v373_v50  ;;  %v2396_v25 = vrot.slane %v2947_v20, %v377_v56 }
 0x141   :  { %2286 = vmatpush2.bf16.msra.mxu0 %v2700_v28 }
 0x142   :  { %2253 = vmatpush2.bf16.msra.mxu1 %v2540_v30  ;;  %2287 = vmatprep.subr.bf16.mxu0 %v2693_v31 }
 0x143   :  { %2254 = vmatprep.subr.bf16.mxu1 %v2533_v33 }
 0x145   :  { %2288 = vmatpush2.bf16.msra.mxu0 %v2692_v39 }
 0x146   :  { %2255 = vmatpush2.bf16.msra.mxu1 %v2532_v40  ;;  %2289 = vmatprep.subr.bf16.mxu0 %v2685_v41 }
 0x147   :  { %2314 = vmatprep.subr.bf16.mxu1 %v2749_v43 }
 0x148   :  { %v1971_v57 = vpop.f32.mrf.mxu0 }
 0x149   :  { %v1972_v62 = vadd.f32 %v1971_v57, %v1931_v15  ;;  %2257 = vmatmul.mubr.bf16.vlgmr.msra.gmra.mxu1 %v2906_v16  ;;  %2290 = vmatpush2.bf16.msra.mxu0 %v2684_v47 }
 0x14a   :  { %2315 = vmatpush1.bf16.msra.mxu1 %v2748_v48  ;;  %v1973_v0 = vpop.f32.mrf.mxu0  ;;  %2291 = vmatprep.subr.bf16.mxu0 %v2677_v49 }
 0x14b   :  { %v2347_v3 = vadd.f32 3.0, %v1972_v62  ;;  %v1974_v4 = vadd.f32 %v1973_v0, %v1933_v26  ;;  %2316 = vmatprep.subr.bf16.mxu1 %v2741_v51  ;;  %2338 = vmatprep.mubr.bf16.mxu1 %v2857_v34 }
 0x14c   :  { %v1975_v8 = vpop.f32.mrf.mxu0 }
 0x14d   :  { %v2355_v59 = vmax.f32 %v2347_v3, 0.0  ;;  %v2348_v16 = vadd.f32 3.0, %v1974_v4  ;;  %2292 = vmatpush2.bf16.msra.mxu0 %v2676_v63 }
 0x14e   :  { %2317 = vmatpush1.bf16.msra.mxu1 %v2740_v1  ;;  %v1976_v12 = vpop.f32.mrf.mxu0  ;;  %2293 = vmatprep.subr.bf16.mxu0 %v2669_v2  ;;  %v2404_v1 = vrot.slane %v2947_v20, %v385_v36 }
 0x14f   :  { %v2363_v15 = vmin.f32 %v2355_v59, 6.0  ;;  %v2356_v17 = vmax.f32 %v2348_v16, 0.0  ;;  %2318 = vmatprep.subr.bf16.mxu1 %v2733_v5  ;;  %v390_v59 = vrot.slane %v2936_v53, %v389_v9  ;;  %v394_v16 = vrot.slane %v2936_v53, %v393_v10 }
 0x151   :  { %v2371_v21 = vmul.f32 %v2363_v15, %v1972_v62  ;;  %v2364_v34 = vmin.f32 %v2356_v17, 6.0  ;;  %2294 = vmatpush2.bf16.msra.mxu0 %v2668_v11  ;;  %v2400_v62 = vrot.slane %v2947_v20, %v381_v35 }
 0x152   :  { %2319 = vmatpush1.bf16.msra.mxu1 %v2732_v13  ;;  %2295 = vmatprep.subr.bf16.mxu0 %v2661_v14 }
 0x153   :  { %v2379_v26 = vmul.f32 0.16666667, %v2371_v21  ;;  %v2372_v27 = vmul.f32 %v2364_v34, %v1974_v4  ;;  %2320 = vmatprep.subr.bf16.mxu1 %v2725_v18 }
 0x155   :  { %v2380_v28 = vmul.f32 0.16666667, %v2372_v27  ;;  %2296 = vmatpush2.bf16.msra.mxu0 %v2660_v22  ;;  %v2429_v29 = vmul.f32 %v2392_v24, %v2379_v26 }
 0x156   :  { %2321 = vmatpush1.bf16.msra.mxu1 %v2724_v23 }
 0x157   :  { %v2430_v30 = vmul.f32 %v2396_v25, %v2380_v28 }
 0x158   :  { %2298 = vmatmul.mubr.bf16.vlgmr.msra.gmra.mxu0 %v2908_v19 }
 0x159   :  { %v2437_v31 = vadd.f32 %v2430_v30, %v2429_v29  ;;  %2753 = vmatmul.mubr.msk.bf16.vlgmr.msra.gmra.mxu1 %vm1851_vm0, %v2914_v52 }
 0x179   :  { %v2012_v32 = vpop.f32.mrf.mxu1 }
 0x17a   :  { %v2013_v39 = vadd.f32 %v2012_v32, %v382_v37 }
 0x17b   :  { %v2014_v50 = vpop.f32.mrf.mxu1 }
 0x17c   :  { %v2015_v41 = vadd.f32 %v2014_v50, %v386_v38  ;;  %v2412_v38 = vrot.slane %v2947_v20, %v393_v10 }
 0x17d   :  { %v2016_v33 = vpop.f32.mrf.mxu1 }
 0x17f   :  { %v2017_v56 = vpop.f32.mrf.mxu1 }
 0x180   :  { %v2408_v56 = vrot.slane %v2947_v20, %v389_v9 }
 0x188   :  { %v2053_v40 = vpop.f32.mrf.mxu0 }
 0x189   :  { %v2054_v19 = vadd.f32 %v2053_v40, %v2013_v39  ;;  %v2094_v43 = vpop.f32.mrf.mxu1 }
 0x18a   :  { %v2055_v44 = vpop.f32.mrf.mxu0 }
 0x18b   :  { %v2095_v45 = vadd.f32 %v2094_v43, %v2054_v19  ;;  %v2056_v52 = vadd.f32 %v2055_v44, %v2015_v41  ;;  %v2096_v46 = vpop.f32.mrf.mxu1 }
 0x18c   :  { %v2057_v58 = vpop.f32.mrf.mxu0 }
 0x18d   :  { %v2349_v47 = vadd.f32 3.0, %v2095_v45  ;;  %v2097_v48 = vadd.f32 %v2096_v46, %v2056_v52  ;;  %v2098_v49 = vpop.f32.mrf.mxu1 }
 0x18e   :  { %v2058_v51 = vpop.f32.mrf.mxu0  ;;  %v401_v49 = vsub.s32 7, %v2933_v42 }
 0x18f   :  { %v2357_v54 = vmax.f32 %v2349_v47, 0.0  ;;  %v2350_v55 = vadd.f32 3.0, %v2097_v48  ;;  %v2099_v57 = vpop.f32.mrf.mxu1  ;;  %v397_v47 = vsub.s32 6, %v2933_v42 }
 0x191   :  { %v2365_v60 = vmin.f32 %v2357_v54, 6.0  ;;  %v2358_v61 = vmax.f32 %v2350_v55, 0.0  ;;  %v398_v51 = vrot.slane %v2936_v53, %v397_v47  ;;  %v402_v54 = vrot.slane %v2936_v53, %v401_v49 }
 0x193   :  { %v2373_v63 = vmul.f32 %v2365_v60, %v2095_v45  ;;  %v2366_v0 = vmin.f32 %v2358_v61, 6.0 }
 0x195   :  { %v2381_v2 = vmul.f32 0.16666667, %v2373_v63  ;;  %v2374_v3 = vmul.f32 %v2366_v0, %v2097_v48 }
 0x197   :  { %v2431_v4 = vmul.f32 %v2400_v62, %v2381_v2  ;;  %v2382_v5 = vmul.f32 0.16666667, %v2374_v3 }
 0x199   :  { %v2438_v6 = vadd.f32 %v2437_v31, %v2431_v4  ;;  %v2432_v7 = vmul.f32 %v2404_v1, %v2382_v5 }
 0x19b   :  { %v2439_v8 = vadd.f32 %v2438_v6, %v2432_v7 }
 0x1c8   :  { %v2135_v11 = vpop.f32.mrf.mxu0 }
 0x1c9   :  { %v2136_v12 = vadd.f32 %v2135_v11, %v390_v59  ;;  %v2176_v13 = vpop.f32.mrf.mxu1  ;;  %v2416_v11 = vrot.slane %v2947_v20, %v397_v47 }
 0x1ca   :  { %v2137_v14 = vpop.f32.mrf.mxu0 }
 0x1cb   :  { %v2177_v15 = vadd.f32 %v2176_v13, %v2136_v12  ;;  %v2138_v17 = vadd.f32 %v2137_v14, %v394_v16  ;;  %v2178_v18 = vpop.f32.mrf.mxu1  ;;  %v2420_v14 = vrot.slane %v2947_v20, %v401_v49 }
 0x1cc   :  { %v2139_v21 = vpop.f32.mrf.mxu0 }
 0x1cd   :  { %v2179_v34 = vadd.f32 %v2178_v18, %v2138_v17  ;;  %v2180_v22 = vpop.f32.mrf.mxu1 }
 0x1ce   :  { %v2140_v23 = vpop.f32.mrf.mxu0  ;;  %v2447_v22 = vstv %s2986_s4 }
 0x1cf   :  { %v2181_v24 = vpop.f32.mrf.mxu1 }
 0x1d8   :  { %v2217_v25 = vpop.f32.mrf.mxu0 }
 0x1d9   :  { %v2218_v26 = vadd.f32 %v2217_v25, %v2177_v15 }
 0x1da   :  { %v2219_v27 = vpop.f32.mrf.mxu0 }
 0x1db   :  { %v2351_v28 = vadd.f32 3.0, %v2218_v26  ;;  %v2220_v29 = vadd.f32 %v2219_v27, %v2179_v34 }
 0x1dc   :  { %v2221_v30 = vpop.f32.mrf.mxu0 }
 0x1dd   :  { %v2359_v31 = vmax.f32 %v2351_v28, 0.0  ;;  %v2352_v32 = vadd.f32 3.0, %v2220_v29 }
 0x1de   :  { %v2222_v50 = vpop.f32.mrf.mxu0 }
 0x1df   :  { %v2367_v33 = vmin.f32 %v2359_v31, 6.0  ;;  %v2360_v35 = vmax.f32 %v2352_v32, 0.0 }
 0x1e1   :  { %v2375_v36 = vmul.f32 %v2367_v33, %v2218_v26  ;;  %v2368_v37 = vmin.f32 %v2360_v35, 6.0 }
 0x1e3   :  { %v2383_v39 = vmul.f32 0.16666667, %v2375_v36  ;;  %v2376_v40 = vmul.f32 %v2368_v37, %v2220_v29 }
 0x1e5   :  { %v2433_v41 = vmul.f32 %v2408_v56, %v2383_v39  ;;  %v2384_v19 = vmul.f32 0.16666667, %v2376_v40 }
 0x1e7   :  { %v2434_v43 = vmul.f32 %v2412_v38, %v2384_v19  ;;  %v2440_v44 = vadd.f32 %v2439_v8, %v2433_v41 }
 0x1e9   :  { %v2441_v45 = vadd.f32 %v2440_v44, %v2434_v43 }
 0x209   :  { %v2258_v52 = vpop.f32.mrf.mxu1 }
 0x20a   :  { %v2259_v55 = vadd.f32 %v2258_v52, %v398_v51 }
 0x20b   :  { %v2260_v46 = vpop.f32.mrf.mxu1 }
 0x20c   :  { %v2261_v60 = vadd.f32 %v2260_v46, %v402_v54 }
 0x20d   :  { %v2262_v58 = vpop.f32.mrf.mxu1 }
 0x20f   :  { %v2263_v48 = vpop.f32.mrf.mxu1 }
 0x218   :  { %v2299_v57 = vpop.f32.mrf.mxu0 }
 0x219   :  { %v2300_v61 = vadd.f32 %v2299_v57, %v2259_v55  ;;  %v2340_v62 = vpop.f32.mrf.mxu1 }
 0x21a   :  { %v2301_v63 = vpop.f32.mrf.mxu0 }
 0x21b   :  { %v2341_v0 = vadd.f32 %v2340_v62, %v2300_v61  ;;  %v2302_v1 = vadd.f32 %v2301_v63, %v2261_v60  ;;  %v2342_v2 = vpop.f32.mrf.mxu1 }
 0x21c   :  { %v2303_v3 = vpop.f32.mrf.mxu0 }
 0x21d   :  { %v2353_v4 = vadd.f32 3.0, %v2341_v0  ;;  %v2343_v5 = vadd.f32 %v2342_v2, %v2302_v1  ;;  %v2344_v6 = vpop.f32.mrf.mxu1 }
 0x21e   :  { %v2304_v7 = vpop.f32.mrf.mxu0 }
 0x21f   :  { %v2361_v8 = vmax.f32 %v2353_v4, 0.0  ;;  %v2354_v42 = vadd.f32 3.0, %v2343_v5  ;;  %v2345_v9 = vpop.f32.mrf.mxu1 }
 0x221   :  { %v2369_v10 = vmin.f32 %v2361_v8, 6.0  ;;  %v2362_v59 = vmax.f32 %v2354_v42, 0.0 }
 0x223   :  { %v2377_v53 = vmul.f32 %v2369_v10, %v2341_v0  ;;  %v2370_v16 = vmin.f32 %v2362_v59, 6.0 }
 0x225   :  { %v2385_v12 = vmul.f32 0.16666667, %v2377_v53  ;;  %v2378_v13 = vmul.f32 %v2370_v16, %v2343_v5 }
 0x227   :  { %v2386_v15 = vmul.f32 0.16666667, %v2378_v13  ;;  %v2435_v17 = vmul.f32 %v2416_v11, %v2385_v12 }
 0x229   :  { %v2436_v18 = vmul.f32 %v2420_v14, %v2386_v15  ;;  %v2442_v21 = vadd.f32 %v2441_v45, %v2435_v17 }
 0x22b   :  { %v2443_v34 = vadd.f32 %v2442_v21, %v2436_v18 }
 0x22d   :  { %2444 = vadd.xlane.f32.xlu0 %v2443_v34 }
 0x2b6   :  { %v2445_v23 = vpop.xlane.xlu0 %2444 }
 0x2b7   :  { %v2448_v24 = vadd.f32 %v2447_v22, %v2445_v23 }
 0x2b9   :  { %v2449_v25 = vsub.f32 0.0, %v2448_v24 }
 0x2bb   :  { %v2450_v26 = vmul.f32 1.442695, %v2449_v25 }
 0x2bd   :  { %2761 = vpow2.f32 %v2450_v26 }
 0x2ca   :  { %v2762_v27 = vpop.eup %2761 }
 0x2cb   :  { %v2452_v28 = vadd.f32 1.0, %v2762_v27 }
 0x2cd   :  { %2763 = vrcp.f32 %v2452_v28 }
 0x2da   :  { %v2764_v29 = vpop.eup %2763 }
 0x2db   :  { %2454 = vst [vmem:[%s2987_s5] sm:$0xff] %v2764_v29 }
 0x2dc   :  { %2459 = vsyncpa [#allocation4], 1 }
 0x2dd   :  { %2460 = vsyncpa [#allocation6], 1 }
 0x2de   :  { %2461 = vsyncpa [#allocation9], 1 }

</bundles_post_ra>
